<compile_context>
chip_gen: v7x
topology: tpu7x:2x2x1
jax: 0.10.0
libtpu: 0.0.40
codegen_flags: <defaults>
</compile_context>

<pallas_src>
import functools
import numpy as np

import jax
import jax.numpy as jnp
from jax.experimental import pallas as pl
from jax.experimental.pallas import tpu as pltpu


# ----------------------------------------------------------------------------
# Generation-aware VMEM budgets
# ----------------------------------------------------------------------------

def _vmem_capacity_bytes():
    try:
        return int(pltpu.get_tpu_info().vmem_capacity_bytes)
    except Exception:
        return 64 * 1024 * 1024  # conservative (v7x-sized) fallback


def _num_tensorcores():
    try:
        d = jax.devices()[0]
        for attr in ("num_cores", "core_count"):
            v = getattr(d, attr, None)
            if isinstance(v, int) and v > 0:
                return v
    except Exception:
        pass
    return 1


_VMEM_CAP = _vmem_capacity_bytes()
_VMEM_LIMIT = max(32 * 1024 * 1024, min(int(_VMEM_CAP * 0.75), 100 * 1024 * 1024))
_VMEM_BUDGET = int(_VMEM_LIMIT * 0.80)   # headroom for Mosaic internals / double-buffering
_NUM_CORES = _num_tensorcores()

_NEG = -1e30                              # finite -inf surrogate for max-pool masking

# Flipped in the demo to exercise the split (gate-precompute) recurrence path.
_FORCE_SPLIT_GATES = False


# ----------------------------------------------------------------------------
# Small helpers
# ----------------------------------------------------------------------------

def _round_up(x, m):
    return ((x + m - 1) // m) * m


def _pad_dim(a, axis, target):
    pad = target - a.shape[axis]
    if pad <= 0:
        return a
    widths = [(0, 0)] * a.ndim
    widths[axis] = (0, pad)
    return jnp.pad(a, widths)


def _get_vgg2l_odim(idim, in_channel=1, out_channel=128):
    idim = idim / in_channel
    idim = np.ceil(np.array(idim, dtype=np.float32) / 2)
    idim = np.ceil(np.array(idim, dtype=np.float32) / 2)
    return int(idim) * out_channel


def _sigmoid(x):
    # stable sigmoid on the EUP (tanh) path
    return 0.5 * (jnp.tanh(0.5 * x) + 1.0)


# ----------------------------------------------------------------------------
# matmul + bias + activation (M and N tiled, K resident per tile)
# ----------------------------------------------------------------------------

def _mm_bias_act_kernel(x_ref, w_ref, b_ref, o_ref, *, act):
    y = jnp.dot(x_ref[...], w_ref[...], preferred_element_type=jnp.float32)
    y = y + b_ref[...]
    if act == "relu":
        y = jnp.maximum(y, 0.0)
    elif act == "tanh":
        y = jnp.tanh(y)
    o_ref[...] = y.astype(o_ref.dtype)


def _pick_mm_tiles(M, K, N, budget):
    if N <= 512:
        tn = N
    else:
        tn = next((c for c in (512, 256, 128) if N % c == 0), 512)
    tm = 512
    # 2x (double buffering) * 4 bytes * (x tile + w tile + out tile)
    while tm > 8 and 8 * (tm * K + K * tn + tm * tn) > budget:
        tm //= 2
    tm = min(max(tm, 8), _round_up(M, 8))
    return tm, tn


def matmul_bias_act(x, w, b, act="none"):
    """y = act(x @ w + b), tiled over rows of x and columns of w."""
    M, K = x.shape
    K2, N = w.shape
    assert K == K2
    tm, tn = _pick_mm_tiles(M, K, N, _VMEM_BUDGET)
    Mp, Np = _round_up(M, tm), _round_up(N, tn)
    xp = jnp.pad(x, ((0, Mp - M), (0, 0))) if Mp != M else x
    wp = jnp.pad(w, ((0, 0), (0, Np - N))) if Np != N else w
    bp = jnp.pad(b, ((0, Np - N),)) if Np != N else b
    out = pl.pallas_call(
        functools.partial(_mm_bias_act_kernel, act=act),
        out_shape=jax.ShapeDtypeStruct((Mp, Np), jnp.float32),
        grid=(Mp // tm, Np // tn),
        in_specs=[
            pl.BlockSpec((tm, K), lambda i, j: (i, 0)),
            pl.BlockSpec((K, tn), lambda i, j: (0, j)),
            pl.BlockSpec((1, tn), lambda i, j: (0, j)),
        ],
        out_specs=pl.BlockSpec((tm, tn), lambda i, j: (i, j)),
        compiler_params=pltpu.CompilerParams(
            dimension_semantics=("parallel", "parallel"),
            vmem_limit_bytes=_VMEM_LIMIT),
    )(xp, wp, bp.reshape(1, Np))
    return out[:M, :N] if (Mp != M or Np != N) else out


# ----------------------------------------------------------------------------
# Fused 3x3 conv (stride 1, pad 1) + ReLU (+ optional fused 2x2 ceil maxpool)
# ----------------------------------------------------------------------------

def _conv3x3_kernel(xw_ref, w_ref, b_ref, o_ref, *, th, H, W, C, Cout, pool):
    xb = xw_ref[0, 0]                                     # (th+2, W+2, C)
    acc = jnp.zeros((th * W, Cout), jnp.float32)
    for kh in range(3):
        rows = xb[kh:kh + th]                             # (th, W+2, C)
        # kw taps concatenated along channels -> one K=3C matmul per kh
        taps = jnp.concatenate(
            [rows[:, 0:W, :], rows[:, 1:W + 1, :], rows[:, 2:W + 2, :]], axis=-1)
        acc = acc + jnp.dot(taps.reshape(th * W, 3 * C), w_ref[kh],
                            preferred_element_type=jnp.float32)
    acc = jnp.maximum(acc + b_ref[...], 0.0)
    y = acc.reshape(th, W, Cout)
    if not pool:
        o_ref[0] = y
        return
    # fused 2x2 / stride 2 / ceil_mode max-pool on the in-register conv output
    r = pl.program_id(1)
    row_idx = r * th + jax.lax.broadcasted_iota(jnp.int32, (th, 1, 1), 0)
    y = jnp.where(row_idx < H, y, _NEG)                   # mask rows past the valid height
    Wc = (W + 1) // 2
    if W % 2:
        y = jnp.concatenate([y, jnp.full((th, 1, Cout), _NEG, jnp.float32)], axis=1)
    hm = jnp.max(y.reshape(th // 2, 2, Wc, 2 * Cout), axis=1)   # H-pair max
    o_ref[0] = jnp.maximum(hm[..., :Cout], hm[..., Cout:])      # W-pair max (lane halves)


def _pick_conv_rows(H, W, C, Cout, pool, budget):
    th = max(2, _round_up(H, 2))

    def need(t):
        win = (t + 2) * (W + 2) * C                 # input window (double buffered)
        outr = (t // 2) if pool else t
        outc = ((W + 1) // 2) if pool else W
        out = outr * outc * Cout                    # output tile (double buffered)
        taps = t * W * 3 * C                        # in-kernel concatenated operand
        acc = 2 * t * W * Cout                      # accumulator + masked copy
        wts = 3 * 3 * C * Cout + Cout
        return 4 * (2 * win + 2 * out + taps + acc + 2 * wts)

    while th > 8 and need(th) > budget:
        th = _round_up(max(8, th // 2), 2)
    return th


def conv3x3_relu(x, w3, b, *, pool):
    """x: (B, H, W, C) NHWC; w3: (3, 3*C, Cout)  (kh, kw*C + c, Cout); b: (Cout,)."""
    B, H, W, C = x.shape
    Cout = w3.shape[-1]
    th = _pick_conv_rows(H, W, C, Cout, pool, _VMEM_BUDGET)
    Hp = _round_up(H, th)
    nt = Hp // th
    # halo padding: one zero row/col around, bottom padded up to Hp
    xp = jnp.pad(x, ((0, 0), (1, Hp + 1 - H), (1, 1), (0, 0)))
    # overlapping (th+2)-row windows materialised once (~(th+2)/th of the input),
    # instead of three full kh-shifted HBM copies.
    xw = jnp.stack([xp[:, r * th:r * th + th + 2] for r in range(nt)], axis=1)

    if pool:
        Hc, Wc = -(-H // 2), -(-W // 2)
        out_shape = jax.ShapeDtypeStruct((B, Hp // 2, Wc, Cout), jnp.float32)
        out_block = (1, th // 2, Wc, Cout)
    else:
        out_shape = jax.ShapeDtypeStruct((B, Hp, W, Cout), jnp.float32)
        out_block = (1, th, W, Cout)

    out = pl.pallas_call(
        functools.partial(_conv3x3_kernel, th=th, H=H, W=W, C=C, Cout=Cout, pool=pool),
        out_shape=out_shape,
        grid=(B, nt),
        in_specs=[
            pl.BlockSpec((1, 1, th + 2, W + 2, C), lambda bi, r: (bi, r, 0, 0, 0)),
            pl.BlockSpec((3, 3 * C, Cout), lambda bi, r: (0, 0, 0)),
            pl.BlockSpec((1, Cout), lambda bi, r: (0, 0)),
        ],
        out_specs=pl.BlockSpec(out_block, lambda bi, r: (bi, r, 0, 0)),
        compiler_params=pltpu.CompilerParams(
            dimension_semantics=("parallel", "parallel"),
            vmem_limit_bytes=_VMEM_LIMIT),
    )(xw, w3, b.reshape(1, Cout))
    return out[:, :(-(-H // 2))] if pool else out[:, :H]


# ----------------------------------------------------------------------------
# Fused bidirectional LSTM recurrence (chunked time, packed-sequence masking)
# ----------------------------------------------------------------------------

def _lstm_cell(g, h_prev, c_prev, valid, H):
    i = _sigmoid(g[:, 0 * H:1 * H])
    f = _sigmoid(g[:, 1 * H:2 * H])
    gg = jnp.tanh(g[:, 2 * H:3 * H])
    o = _sigmoid(g[:, 3 * H:4 * H])
    c_new = f * c_prev + i * gg
    h_new = o * jnp.tanh(c_new)
    c_out = jnp.where(valid, c_new, c_prev)
    h_out = jnp.where(valid, h_new, h_prev)
    return h_out, c_out, jnp.where(valid, h_new, 0.0)   # pad_packed zero-fills padding


def _bilstm_time_chunk(gf_buf, gb_buf, lens_ref, whf_ref, whb_ref, yf_ref, yb_ref,
                       hf_sc, cf_sc, hb_sc, cb_sc, *, hidden, chunk, nc):
    c = pl.program_id(1)

    @pl.when(c == 0)
    def _():
        hf_sc[...] = jnp.zeros_like(hf_sc)
        cf_sc[...] = jnp.zeros_like(cf_sc)
        hb_sc[...] = jnp.zeros_like(hb_sc)
        cb_sc[...] = jnp.zeros_like(cb_sc)

    H = hidden
    whf = whf_ref[...]
    whb = whb_ref[...]
    lens = lens_ref[...]                                  # (Bb, 1) int32 sequence lengths

    def step(i, carry):
        hf, cf, hb, cb = carry
        gf = gf_buf[i] + jnp.dot(hf, whf, preferred_element_type=jnp.float32)
        gb = gb_buf[chunk - 1 - i] + jnp.dot(hb, whb, preferred_element_type=jnp.float32)
        tf = c * chunk + i
        tb = (nc - 1 - c) * chunk + (chunk - 1 - i)
        hf, cf, yf = _lstm_cell(gf, hf, cf, tf < lens, H)
        hb, cb, yb = _lstm_cell(gb, hb, cb, tb < lens, H)
        yf_ref[i] = yf
        yb_ref[chunk - 1 - i] = yb
        return hf, cf, hb, cb

    hf, cf, hb, cb = jax.lax.fori_loop(
        0, chunk, step, (hf_sc[...], cf_sc[...], hb_sc[...], cb_sc[...]))
    hf_sc[...] = hf
    cf_sc[...] = cf
    hb_sc[...] = hb
    cb_sc[...] = cb


def _bilstm_fused_kernel(lens_ref, xf_ref, xb_ref, wif_ref, wib_ref, b_ref,
                         whf_ref, whb_ref, yf_ref, yb_ref,
                         gf_sc, gb_sc, hf_sc, cf_sc, hb_sc, cb_sc,
                         *, hidden, chunk, nc):
    H = hidden
    ch, Bb, D = xf_ref.shape
    b = b_ref[...]                                        # (1, 8H)
    # per-chunk gate precompute on the MXU (no (T,B,8H) HBM round trip)
    xf = xf_ref[...].reshape(chunk * Bb, D)
    xb = xb_ref[...].reshape(chunk * Bb, D)
    gf_sc[...] = (jnp.dot(xf, wif_ref[...], preferred_element_type=jnp.float32)
                  + b[:, :4 * H]).reshape(chunk, Bb, 4 * H)
    gb_sc[...] = (jnp.dot(xb, wib_ref[...], preferred_element_type=jnp.float32)
                  + b[:, 4 * H:]).reshape(chunk, Bb, 4 * H)
    _bilstm_time_chunk(gf_sc, gb_sc, lens_ref, whf_ref, whb_ref, yf_ref, yb_ref,
                       hf_sc, cf_sc, hb_sc, cb_sc, hidden=H, chunk=chunk, nc=nc)


def _bilstm_gates_kernel(lens_ref, gf_ref, gb_ref, whf_ref, whb_ref, yf_ref, yb_ref,
                         hf_sc, cf_sc, hb_sc, cb_sc, *, hidden, chunk, nc):
    _bilstm_time_chunk(gf_ref, gb_ref, lens_ref, whf_ref, whb_ref, yf_ref, yb_ref,
                       hf_sc, cf_sc, hb_sc, cb_sc, hidden=hidden, chunk=chunk, nc=nc)


def _pick_lstm_chunk(T, Bb, D, H, fused, budget):
    # resident weights counted x2 in case Pallas double-buffers constant-index inputs
    fixed = 2 * 4 * (2 * H * 4 * H)                        # w_hh_f + w_hh_b
    if fused:
        fixed += 2 * 4 * (2 * D * 4 * H + 8 * H)           # w_ih_f/b + bias
        per = 4 * (2 * 2 * Bb * D + 2 * 2 * Bb * H + 2 * Bb * 4 * H)
    else:
        per = 4 * (2 * 2 * Bb * 4 * H + 2 * 2 * Bb * H)
    chunk = max(1, min(128, T))
    while chunk > 8 and fixed + chunk * per > budget:
        chunk = max(8, chunk // 2)
    return chunk, (fixed + chunk * per) <= budget


def _bilstm_pallas_fused(lens, xpad, p, H, nb, Bb, chunk, nc):
    Tpad, B, D = xpad.shape
    return pl.pallas_call(
        functools.partial(_bilstm_fused_kernel, hidden=H, chunk=chunk, nc=nc),
        out_shape=(jax.ShapeDtypeStruct((Tpad, B, H), jnp.float32),
                   jax.ShapeDtypeStruct((Tpad, B, H), jnp.float32)),
        grid=(nb, nc),
        in_specs=[
            pl.BlockSpec((Bb, 1), lambda n, c: (n, 0)),
            pl.BlockSpec((chunk, Bb, D), lambda n, c: (c, n, 0)),
            pl.BlockSpec((chunk, Bb, D), lambda n, c: (nc - 1 - c, n, 0)),
            pl.BlockSpec((D, 4 * H), lambda n, c: (0, 0)),
            pl.BlockSpec((D, 4 * H), lambda n, c: (0, 0)),
            pl.BlockSpec((1, 8 * H), lambda n, c: (0, 0)),
            pl.BlockSpec((H, 4 * H), lambda n, c: (0, 0)),
            pl.BlockSpec((H, 4 * H), lambda n, c: (0, 0)),
        ],
        out_specs=(pl.BlockSpec((chunk, Bb, H), lambda n, c: (c, n, 0)),
                   pl.BlockSpec((chunk, Bb, H), lambda n, c: (nc - 1 - c, n, 0))),
        scratch_shapes=[pltpu.VMEM((chunk, Bb, 4 * H), jnp.float32),
                        pltpu.VMEM((chunk, Bb, 4 * H), jnp.float32)]
                       + [pltpu.VMEM((Bb, H), jnp.float32)] * 4,
        compiler_params=pltpu.CompilerParams(
            dimension_semantics=("parallel", "arbitrary"),
            vmem_limit_bytes=_VMEM_LIMIT),
    )(lens, xpad, xpad, p["w_ih_f"], p["w_ih_b"], p["b"].reshape(1, 8 * H),
      p["w_hh_f"], p["w_hh_b"])


def _bilstm_pallas_gates(lens, gf, gb, p, H, nb, Bb, chunk, nc):
    Tpad, B, _ = gf.shape
    return pl.pallas_call(
        functools.partial(_bilstm_gates_kernel, hidden=H, chunk=chunk, nc=nc),
        out_shape=(jax.ShapeDtypeStruct((Tpad, B, H), jnp.float32),
                   jax.ShapeDtypeStruct((Tpad, B, H), jnp.float32)),
        grid=(nb, nc),
        in_specs=[
            pl.BlockSpec((Bb, 1), lambda n, c: (n, 0)),
            pl.BlockSpec((chunk, Bb, 4 * H), lambda n, c: (c, n, 0)),
            pl.BlockSpec((chunk, Bb, 4 * H), lambda n, c: (nc - 1 - c, n, 0)),
            pl.BlockSpec((H, 4 * H), lambda n, c: (0, 0)),
            pl.BlockSpec((H, 4 * H), lambda n, c: (0, 0)),
        ],
        out_specs=(pl.BlockSpec((chunk, Bb, H), lambda n, c: (c, n, 0)),
                   pl.BlockSpec((chunk, Bb, H), lambda n, c: (nc - 1 - c, n, 0))),
        scratch_shapes=[pltpu.VMEM((Bb, H), jnp.float32)] * 4,
        compiler_params=pltpu.CompilerParams(
            dimension_semantics=("parallel", "arbitrary"),
            vmem_limit_bytes=_VMEM_LIMIT),
    )(lens, gf, gb, p["w_hh_f"], p["w_hh_b"])


def bilstm_layer(x_tm, ilens, p, H):
    """One bidirectional LSTM layer, time-major. x_tm: (T, B, D) -> (T, B, 2H)."""
    T, B, D = x_tm.shape
    # split the batch across TensorCores only when the per-core batch stays sublane-aligned
    nb = _NUM_CORES if (_NUM_CORES > 1 and B % _NUM_CORES == 0
                        and (B // _NUM_CORES) % 8 == 0) else 1
    Bb = B // nb
    lens = jnp.asarray(np.asarray(ilens), jnp.int32).reshape(B, 1)

    chunk, fits = _pick_lstm_chunk(T, Bb, D, H, True, _VMEM_BUDGET)
    use_fused = fits and not _FORCE_SPLIT_GATES
    if not use_fused:
        chunk, _ = _pick_lstm_chunk(T, Bb, D, H, False, _VMEM_BUDGET)
    Tpad = _round_up(T, chunk)
    nc = Tpad // chunk

    if use_fused:
        xpad = jnp.pad(x_tm, ((0, Tpad - T), (0, 0), (0, 0))) if Tpad != T else x_tm
        yf, yb = _bilstm_pallas_fused(lens, xpad, p, H, nb, Bb, chunk, nc)
    else:
        # gate precompute in HBM (only for layers whose w_ih does not fit the VMEM budget)
        gf = matmul_bias_act(x_tm.reshape(T * B, D), p["w_ih_f"], p["b"][:4 * H])
        gb = matmul_bias_act(x_tm.reshape(T * B, D), p["w_ih_b"], p["b"][4 * H:])
        gf = gf.reshape(T, B, 4 * H)
        gb = gb.reshape(T, B, 4 * H)
        if Tpad != T:
            gf = jnp.pad(gf, ((0, Tpad - T), (0, 0), (0, 0)))
            gb = jnp.pad(gb, ((0, Tpad - T), (0, 0), (0, 0)))
        yf, yb = _bilstm_pallas_gates(lens, gf, gb, p, H, nb, Bb, chunk, nc)

    return jnp.concatenate([yf, yb], axis=-1)[:T]          # (T, B, 2H)


# ----------------------------------------------------------------------------
# VGG2L / BLSTMP / BLSTM forward (glue in plain JAX)
# ----------------------------------------------------------------------------

def vgg2l_forward(p, xs, ilens, in_channel=1):
    B, T, F = xs.shape
    C = in_channel
    x = xs.reshape(B, T, C, F // C)                 # torch .view(B, T, C, F//C)
    x = jnp.transpose(x, (0, 1, 3, 2))              # NHWC: (B, H=T, W=F//C, Cin)
    x = _pad_dim(x, 3, p["cin_pad"])                # exact zero channel padding

    x = conv3x3_relu(x, p["w11"], p["b11"], pool=False)
    x = conv3x3_relu(x, p["w12"], p["b12"], pool=True)    # conv1_2 + maxpool fused
    x = conv3x3_relu(x, p["w21"], p["b21"], pool=False)
    x = conv3x3_relu(x, p["w22"], p["b22"], pool=True)    # conv2_2 + maxpool fused

    ilens = np.array(np.ceil(np.array(ilens, dtype=np.float32) / 2), dtype=np.int64)
    ilens = np.array(np.ceil(np.array(ilens, dtype=np.float32) / 2), dtype=np.int64)

    B2, T2, W2, C2 = x.shape
    Tmax = int(ilens.max())
    x = x[:, :Tmax]
    # channel-major flatten + time-major layout in a single transpose:
    # (B, T2, W2, C) -> (T2, B, C, W2) -> (T2, B, C*W2)
    x_tm = jnp.transpose(x, (1, 0, 3, 2)).reshape(Tmax, B2, C2 * W2)
    # pad_list(xs[i, :ilens[i]], 0.0): zero padded frames
    mask = (jnp.arange(Tmax)[:, None] < jnp.asarray(ilens)[None, :]).astype(x_tm.dtype)
    x_tm = x_tm * mask[:, :, None]
    return x_tm, ilens


def blstmp_forward(p, x_tm, ilens, elayers, cdim, subsample):
    for l in range(elayers):
        lp = p["layers"][l]
        y_tm = bilstm_layer(x_tm, ilens, lp, cdim)          # (T, B, 2H)
        sub = subsample[l + 1]
        if sub > 1:
            y_tm = y_tm[::sub]
            ilens = np.asarray([(int(i) + 1) // sub for i in ilens], dtype=np.int64)
        Tl, B, _ = y_tm.shape
        proj = matmul_bias_act(y_tm.reshape(Tl * B, 2 * cdim),
                               lp["bt_w"], lp["bt_b"], act="tanh")
        x_tm = proj.reshape(Tl, B, -1)
    return jnp.transpose(x_tm, (1, 0, 2)), ilens


def blstm_forward(p, x_tm, ilens, elayers, cdim):
    for l in range(elayers):
        x_tm = bilstm_layer(x_tm, ilens, p["layers"][l], cdim)
    T, B, _ = x_tm.shape
    proj = matmul_bias_act(x_tm.reshape(T * B, 2 * cdim),
                           p["l_last_w"], p["l_last_b"], act="tanh")
    return jnp.transpose(proj.reshape(T, B, -1), (1, 0, 2)), ilens


# ----------------------------------------------------------------------------
# Encoder
# ----------------------------------------------------------------------------

class Encoder:
    def __init__(self, etype, idim, elayers, eunits, eprojs, subsample, dropout,
                 in_channel=1, key=None):
        self.etype = etype
        self.elayers = elayers
        self.cdim = eunits
        self.hdim = eprojs
        self.subsample = subsample
        self.in_channel = in_channel

        key = jax.random.PRNGKey(0) if key is None else key
        ks = iter(jax.random.split(key, 256))

        def nrm(shape, s=0.1):
            return jax.random.normal(next(ks), shape, jnp.float32) * s

        def conv_params(cin, cout, cin_p, cout_p):
            w = nrm((3, 3, cin, cout))
            b = nrm((cout,))
            w = _pad_dim(_pad_dim(w, 2, cin_p), 3, cout_p)   # zero channel padding (exact)
            b = _pad_dim(b, 0, cout_p)
            return w.reshape(3, 3 * cin_p, cout_p), b        # (kh, kw*C + c, Cout)

        def lstm_pair(D, H):
            # gate order (i, f, g, o); bias = b_ih + b_hh folded; fw/bw kept separate
            return {"w_ih_f": nrm((D, 4 * H)),
                    "w_ih_b": nrm((D, 4 * H)),
                    "b": nrm((8 * H,)) + nrm((8 * H,)),
                    "w_hh_f": nrm((H, 4 * H)),
                    "w_hh_b": nrm((H, 4 * H))}

        if etype in ("vggblstmp", "vggblstm"):
            cin0 = max(8, in_channel)
            w11, b11 = conv_params(in_channel, 64, cin0, 128)
            w12, b12 = conv_params(64, 64, 128, 128)
            w21, b21 = conv_params(64, 128, 128, 128)
            w22, b22 = conv_params(128, 128, 128, 128)
            self.vgg = {"cin_pad": cin0,
                        "w11": w11, "b11": b11, "w12": w12, "b12": b12,
                        "w21": w21, "b21": b21, "w22": w22, "b22": b22}
            rnn_idim = _get_vgg2l_odim(idim, in_channel=in_channel)
        elif etype in ("blstmp", "blstm"):
            self.vgg = None
            rnn_idim = idim
        else:
            raise ValueError("Error: need to specify an appropriate encoder architecture")

        if etype in ("blstmp", "vggblstmp"):
            layers = []
            for i in range(elayers):
                D = rnn_idim if i == 0 else eprojs
                layer = lstm_pair(D, eunits)
                layer["bt_w"] = nrm((2 * eunits, eprojs))
                layer["bt_b"] = nrm((eprojs,))
                layers.append(layer)
            self.rnn = {"layers": layers}
        else:  # blstm / vggblstm: stacked nn.LSTM + final projection
            layers = []
            for i in range(elayers):
                D = rnn_idim if i == 0 else 2 * eunits
                layers.append(lstm_pair(D, eunits))
            self.rnn = {"layers": layers,
                        "l_last_w": nrm((2 * eunits, eprojs)),
                        "l_last_b": nrm((eprojs,))}

    def __call__(self, xs, ilens):
        ilens = np.asarray(ilens, dtype=np.int64)
        if self.etype in ("vggblstmp", "vggblstm"):
            x_tm, ilens = vgg2l_forward(self.vgg, xs, ilens, self.in_channel)
        else:
            x_tm = jnp.transpose(xs, (1, 0, 2))              # time-major once
        if self.etype in ("blstmp", "vggblstmp"):
            return blstmp_forward(self.rnn, x_tm, ilens, self.elayers, self.cdim,
                                  self.subsample)
        return blstm_forward(self.rnn, x_tm, ilens, self.elayers, self.cdim)


# ----------------------------------------------------------------------------
# Demo
# ----------------------------------------------------------------------------

if __name__ == "__main__":
    B, T, idim = 2, 16, 16
    elayers, eunits, eprojs = 2, 16, 32
    subsample = [1, 2, 1]          # "1_2_1": subsample factor 2 after layer 0

    enc = Encoder("vggblstmp", idim, elayers, eunits, eprojs, subsample,
                  dropout=0.0, in_channel=1, key=jax.random.PRNGKey(0))

    xs = jax.random.normal(jax.random.PRNGKey(1), (B, T, idim), jnp.float32)
    ilens = np.array([16, 12], dtype=np.int64)

    ys, olens = enc(xs, ilens)
    ys = jax.block_until_ready(ys)

    # VGG: ilens -> [8,6] -> [4,3]; T2 = 4; layer0 subsample 2 -> T = 2, olens = [2,2]
    assert ys.shape == (B, 2, eprojs), ys.shape
    assert list(np.asarray(olens)) == [2, 2], olens
    assert bool(jnp.all(jnp.isfinite(ys)))

    # also exercise the plain BLSTM path and the split (gate-precompute) recurrence path
    _FORCE_SPLIT_GATES = True
    enc2 = Encoder("blstm", idim, 1, eunits, 24, [1, 1],
                   dropout=0.0, in_channel=1, key=jax.random.PRNGKey(2))
    ys2, olens2 = enc2(xs, ilens)
    ys2 = jax.block_until_ready(ys2)
    _FORCE_SPLIT_GATES = False
    assert ys2.shape == (B, T, 24), ys2.shape
    assert bool(jnp.all(jnp.isfinite(ys2)))

    print("KERNEL_OK")
</pallas_src>

<mosaic_0001>
module attributes {stable_mosaic.version = 11 : i64} {
  func.func @_conv3x3_kernel(%arg0: i32, %arg1: i32, %arg2: memref<1x1x18x18x8xf32, #tpu.memory_space<vmem>>, %arg3: memref<3x24x128xf32, #tpu.memory_space<vmem>>, %arg4: memref<1x128xf32, #tpu.memory_space<vmem>>, %arg5: memref<1x16x16x128xf32, #tpu.memory_space<vmem>>) attributes {dimension_semantics = [#tpu.dimension_semantics<parallel>, #tpu.dimension_semantics<parallel>], iteration_bounds = array<i64: 2, 1>, scalar_prefetch = 0 : i64, scratch_operands = 0 : i64, tpu.core_type = #tpu.core_type<tc>, window_params = [{transform_indices = @transform_0, window_bounds = array<i64: 1, 1, 18, 18, 8>}, {pipeline_mode = #tpu.pipeline_mode<synchronous>, transform_indices = @transform_1, window_bounds = array<i64: 3, 24, 128>}, {pipeline_mode = #tpu.pipeline_mode<synchronous>, transform_indices = @transform_2, window_bounds = array<i64: 1, 128>}, {transform_indices = @transform_3, window_bounds = array<i64: 1, 16, 16, 128>}]} {
    %c0 = arith.constant 0 : index
    %c0_0 = arith.constant 0 : index
    %c0_1 = arith.constant 0 : index
    %c0_2 = arith.constant 0 : index
    %c0_3 = arith.constant 0 : index
    %0 = vector.load %arg2[%c0, %c0_0, %c0_1, %c0_2, %c0_3] : memref<1x1x18x18x8xf32, #tpu.memory_space<vmem>>, vector<1x1x18x18x8xf32>
    %1 = vector.shape_cast %0 : vector<1x1x18x18x8xf32> to vector<18x18x8xf32>
    %cst = arith.constant 0.000000e+00 : f32
    %2 = vector.broadcast %cst : f32 to vector<256x128xf32>
    %3 = vector.extract_strided_slice %1 {offsets = [0, 0, 0], sizes = [16, 18, 8], strides = [1, 1, 1]} : vector<18x18x8xf32> to vector<16x18x8xf32>
    %4 = vector.extract_strided_slice %3 {offsets = [0, 0, 0], sizes = [16, 16, 8], strides = [1, 1, 1]} : vector<16x18x8xf32> to vector<16x16x8xf32>
    %5 = vector.extract_strided_slice %3 {offsets = [0, 1, 0], sizes = [16, 16, 8], strides = [1, 1, 1]} : vector<16x18x8xf32> to vector<16x16x8xf32>
    %6 = vector.extract_strided_slice %3 {offsets = [0, 2, 0], sizes = [16, 16, 8], strides = [1, 1, 1]} : vector<16x18x8xf32> to vector<16x16x8xf32>
    %7 = tpu.concatenate %4, %5, %6 in 2 : vector<16x16x8xf32>, vector<16x16x8xf32>, vector<16x16x8xf32> -> vector<16x16x24xf32>
    %8 = vector.shape_cast %7 : vector<16x16x24xf32> to vector<256x24xf32>
    %c0_4 = arith.constant 0 : index
    %c0_5 = arith.constant 0 : index
    %c0_6 = arith.constant 0 : index
    %9 = vector.load %arg3[%c0_4, %c0_5, %c0_6] : memref<3x24x128xf32, #tpu.memory_space<vmem>>, vector<1x24x128xf32>
    %10 = vector.shape_cast %9 : vector<1x24x128xf32> to vector<24x128xf32>
    %cst_7 = arith.constant dense<0.000000e+00> : vector<256x128xf32>
    %11 = tpu.matmul %8, %10, %cst_7 {dimension_numbers = #tpu.dot_dimension_numbers<[1], [0], [0], [1], [0, 0, 1, 1], [], []>} : vector<256x24xf32>, vector<24x128xf32>, vector<256x128xf32> -> vector<256x128xf32>
    %12 = arith.addf %2, %11 : vector<256x128xf32>
    %13 = vector.extract_strided_slice %1 {offsets = [1, 0, 0], sizes = [16, 18, 8], strides = [1, 1, 1]} : vector<18x18x8xf32> to vector<16x18x8xf32>
    %14 = vector.extract_strided_slice %13 {offsets = [0, 0, 0], sizes = [16, 16, 8], strides = [1, 1, 1]} : vector<16x18x8xf32> to vector<16x16x8xf32>
    %15 = vector.extract_strided_slice %13 {offsets = [0, 1, 0], sizes = [16, 16, 8], strides = [1, 1, 1]} : vector<16x18x8xf32> to vector<16x16x8xf32>
    %16 = vector.extract_strided_slice %13 {offsets = [0, 2, 0], sizes = [16, 16, 8], strides = [1, 1, 1]} : vector<16x18x8xf32> to vector<16x16x8xf32>
    %17 = tpu.concatenate %14, %15, %16 in 2 : vector<16x16x8xf32>, vector<16x16x8xf32>, vector<16x16x8xf32> -> vector<16x16x24xf32>
    %18 = vector.shape_cast %17 : vector<16x16x24xf32> to vector<256x24xf32>
    %c1 = arith.constant 1 : index
    %c0_8 = arith.constant 0 : index
    %c0_9 = arith.constant 0 : index
    %19 = vector.load %arg3[%c1, %c0_8, %c0_9] : memref<3x24x128xf32, #tpu.memory_space<vmem>>, vector<1x24x128xf32>
    %20 = vector.shape_cast %19 : vector<1x24x128xf32> to vector<24x128xf32>
    %cst_10 = arith.constant dense<0.000000e+00> : vector<256x128xf32>
    %21 = tpu.matmul %18, %20, %cst_10 {dimension_numbers = #tpu.dot_dimension_numbers<[1], [0], [0], [1], [0, 0, 1, 1], [], []>} : vector<256x24xf32>, vector<24x128xf32>, vector<256x128xf32> -> vector<256x128xf32>
    %22 = arith.addf %12, %21 : vector<256x128xf32>
    %23 = vector.extract_strided_slice %1 {offsets = [2, 0, 0], sizes = [16, 18, 8], strides = [1, 1, 1]} : vector<18x18x8xf32> to vector<16x18x8xf32>
    %24 = vector.extract_strided_slice %23 {offsets = [0, 0, 0], sizes = [16, 16, 8], strides = [1, 1, 1]} : vector<16x18x8xf32> to vector<16x16x8xf32>
    %25 = vector.extract_strided_slice %23 {offsets = [0, 1, 0], sizes = [16, 16, 8], strides = [1, 1, 1]} : vector<16x18x8xf32> to vector<16x16x8xf32>
    %26 = vector.extract_strided_slice %23 {offsets = [0, 2, 0], sizes = [16, 16, 8], strides = [1, 1, 1]} : vector<16x18x8xf32> to vector<16x16x8xf32>
    %27 = tpu.concatenate %24, %25, %26 in 2 : vector<16x16x8xf32>, vector<16x16x8xf32>, vector<16x16x8xf32> -> vector<16x16x24xf32>
    %28 = vector.shape_cast %27 : vector<16x16x24xf32> to vector<256x24xf32>
    %c2 = arith.constant 2 : index
    %c0_11 = arith.constant 0 : index
    %c0_12 = arith.constant 0 : index
    %29 = vector.load %arg3[%c2, %c0_11, %c0_12] : memref<3x24x128xf32, #tpu.memory_space<vmem>>, vector<1x24x128xf32>
    %30 = vector.shape_cast %29 : vector<1x24x128xf32> to vector<24x128xf32>
    %cst_13 = arith.constant dense<0.000000e+00> : vector<256x128xf32>
    %31 = tpu.matmul %28, %30, %cst_13 {dimension_numbers = #tpu.dot_dimension_numbers<[1], [0], [0], [1], [0, 0, 1, 1], [], []>} : vector<256x24xf32>, vector<24x128xf32>, vector<256x128xf32> -> vector<256x128xf32>
    %32 = arith.addf %22, %31 : vector<256x128xf32>
    %c0_14 = arith.constant 0 : index
    %c0_15 = arith.constant 0 : index
    %33 = vector.load %arg4[%c0_14, %c0_15] : memref<1x128xf32, #tpu.memory_space<vmem>>, vector<1x128xf32>
    %34 = vector.broadcast %33 : vector<1x128xf32> to vector<256x128xf32>
    %35 = arith.addf %32, %34 : vector<256x128xf32>
    %cst_16 = arith.constant 0.000000e+00 : f32
    %36 = vector.broadcast %cst_16 : f32 to vector<256x128xf32>
    %37 = arith.maximumf %35, %36 : vector<256x128xf32>
    %38 = vector.shape_cast %37 : vector<256x128xf32> to vector<16x16x128xf32>
    %c0_17 = arith.constant 0 : index
    %c0_18 = arith.constant 0 : index
    %c0_19 = arith.constant 0 : index
    %c0_20 = arith.constant 0 : index
    %39 = vector.load %arg5[%c0_17, %c0_18, %c0_19, %c0_20] : memref<1x16x16x128xf32, #tpu.memory_space<vmem>>, vector<1x16x16x128xf32>
    %40 = vector.shape_cast %39 : vector<1x16x16x128xf32> to vector<16x16x128xf32>
    %41 = vector.shape_cast %38 : vector<16x16x128xf32> to vector<1x16x16x128xf32>
    tpu.vector_store %arg5[%c0_17, %c0_18, %c0_19, %c0_20], %41 {strides = array<i32>} : memref<1x16x16x128xf32, #tpu.memory_space<vmem>>, vector<1x16x16x128xf32>,
    return
  }
  func.func @transform_0(%arg0: i32, %arg1: i32) -> (i32, i32, i32, i32, i32) {
    %c0_i32 = arith.constant 0 : i32
    %c0_i32_0 = arith.constant 0 : i32
    %c0_i32_1 = arith.constant 0 : i32
    %c0_i32_2 = arith.constant 0 : i32
    return %arg0, %arg1, %c0_i32, %c0_i32_0, %c0_i32_1 : i32, i32, i32, i32, i32
  }
  func.func @transform_1(%arg0: i32, %arg1: i32) -> (i32, i32, i32) {
    %c0_i32 = arith.constant 0 : i32
    %c0_i32_0 = arith.constant 0 : i32
    %c0_i32_1 = arith.constant 0 : i32
    %c0_i32_2 = arith.constant 0 : i32
    return %c0_i32, %c0_i32_0, %c0_i32_1 : i32, i32, i32
  }
  func.func @transform_2(%arg0: i32, %arg1: i32) -> (i32, i32) {
    %c0_i32 = arith.constant 0 : i32
    %c0_i32_0 = arith.constant 0 : i32
    %c0_i32_1 = arith.constant 0 : i32
    return %c0_i32, %c0_i32_0 : i32, i32
  }
  func.func @transform_3(%arg0: i32, %arg1: i32) -> (i32, i32, i32, i32) {
    %c0_i32 = arith.constant 0 : i32
    %c0_i32_0 = arith.constant 0 : i32
    %c0_i32_1 = arith.constant 0 : i32
    return %arg0, %arg1, %c0_i32, %c0_i32_0 : i32, i32, i32, i32
  }
}

</mosaic_0001>

<bundles_post_ra>
// kernel: tpu_custom_call.1
= control target key start
LH: loop header
LB: loop body
LE: loop exit
PB: predicated region body
PF: predicated region fallthrough
CT: control target
= control target key end

     0   :  { %8 = vsyncpa [#allocation3], 0  ;;  %s3446_s0 = inlined_call_operand.vmem [shape: f32[2,1,18,18,8], index: 0, kind: input, shape index: {}]   ;;  %s3447_s1 = inlined_call_operand.vmem [shape: f32[3,24,128], index: 1, kind: input, shape index: {}]   ;;  %s3448_s2 = inlined_call_operand.vmem [shape: f32[1,128], index: 2, kind: input, shape index: {}]   ;;  %s3449_s3 = inlined_call_operand.hbm [shape: f32[2,16,16,128], index: 3, kind: output, shape index: {}]  }
   0x1   :  { %10 = vsyncpa [#allocation3 + $0x1], 0  ;;  %s2433_s12 = smov 0   ;;  %s2435_s13 = smov 0  }
   0x2   :  { %s2437_s14 = smov 0   ;;  %s2439_s15 = smov 0  }
   0x3   :  { %s2441_s16 = smov 0   ;;  %s2443_s17 = smov 0  }
   0x4 LB: > { %s1807_s18 = sadd.s32 4294967295, %s2407_s17   ;;  %s1808_s19 = sadd.s32 4294967294, %s2407_s17   ;;  %s2407_s17 = sphi %s2443_s17, %s16_s17   ;;  %s2403_s16 = sphi %s2441_s16, %s3490_s16   ;;  %s2399_s15 = sphi %s2439_s15, %s3489_s15   ;;  %s2395_s14 = sphi %s2437_s14, %s3488_s14   ;;  %s2391_s13 = sphi %s2435_s13, %s3487_s13   ;;  %s2387_s12 = sphi %s2433_s12, %s3486_s12  }
   0x5   : > { %s28_s20 = sadd.s32 1, %s2403_s16  ;;  %s107_s21 = sadd.s32 1, %s2395_s14 }
   0x6   : > { %p30_p0 = scmp.ge.s32.totalorder %s28_s20, 2  ;;  %p117_p1 = scmp.ne.s32.totalorder %s2395_s14, %s2391_s13 }
   0x7   : > { %p118_p2 = scmp.eq.s32.totalorder %s1807_s18, 1  ;;  %p123_p3 = scmp.ne.s32.totalorder %s2391_s13, %s2387_s12 }
   0x8   : > { %s3492_s20 = smov (%p30_p0, %s28_s20), 0  ;;  %p124_p5 = scmp.eq.s32.totalorder %s1808_s19, 1 }
   0x9   : > { %p2473_p4 = por %p118_p2, %p117_p1  ;;  %s102_s23 = ssub.s32 %s2403_s16, %s3492_s20 }
   0xa   : > { %p1811_p6 = scmp.ge.s32.totalorder %s2407_s17, 1  ;;  %p105_p7 = scmp.eq.s32.totalorder %s102_s23, 0 }
   0xb   : > { %p2480_p8 = por %p124_p5, %p123_p3  ;;  %p160_p9 = scmp.lt.s32.totalorder %s2407_s17, 3 }
   0xc   : > { %s2486_s25 = scalar_select %p105_p7, %s2395_s14, %s107_s21  }
   0xd   : > { %p161_p10 = pnand %p1811_p6, %p160_p9 }
   0xe   : > { %p188_p11 = scmp.lt.s32.totalorder (!%p161_p10), %s2399_s15, 1  ;;  %v1814_v0 = vld [vmem:[%s3447_s1 + $0x18] sm:$0xff] (!%p161_p10)  ;;  %v1815_v1 = vld [vmem:[%s3447_s1 + $0x20] sm:$0xff] (!%p161_p10)  ;;  %v721_v4 = vld [vmem:[%s3447_s1 + $0x8] sm:$0xff] (!%p161_p10)  ;;  %vm300_vm0 = vcmask (!%p161_p10), 1046528   ;;  %s2409_s18 = smov (!%p161_p10), 8  }
   0xf   : > { %164 = sbr.rel (%p161_p10) target bundleno = 546 (0x222), region = 32  ;;  %v720_v2 = vld [vmem:[%s3447_s1] sm:$0xff] (!%p161_p10)  ;;  %v2190_v3 = vpack.c.bf16 (!%p161_p10), %v1815_v1, %v1814_v0  ;;  %vm477_vm1 = vcmask (!%p161_p10), 1045504   ;;  %s2410_s19 = smov (!%p161_p10), 16   ;;  %v1816_v49 = vld [vmem:[%s3447_s1 + $0x28] sm:$0xff] (!%p161_p10)  ;;  %v2584_v50 = vld [vmem:[%s3447_s1 + $0x10] sm:$0xff] (!%p161_p10) }
  0x10   : > { %v2502_v5 = vpack.c.bf16 (!%p161_p10), %v721_v4, %v720_v2  ;;  %vm654_vm2 = vcmask (!%p161_p10), 64512   ;;  %vm687_vm3 = vcmask (!%p161_p10), 130048   ;;  %vm756_vm4 = vcmask (!%p161_p10), 195584   ;;  %s185_s7 = sand.u32 (!%p161_p10), 1, %s2391_s13   ;;  %s2411_s29 = smov (!%p161_p10), [#allocation2]  }
  0x11   : > { %2191 = vmatprep.subr.bf16.mxu1 (!%p161_p10), %v2190_v3  ;;  %s1812_s10 = sshll.u32 (!%p161_p10), %s185_s7, 8  ;;  %s2333_s30 = sshll.u32 (!%p161_p10), %s2411_s29, 4  ;;  %s2334_s30 = int_to_ptr.vmem [resolvable:$false] %s2333_s30 }
  0x12   : > { %2195 = vmatprep.subr.bf16.mxu0 (!%p161_p10), %v2502_v5  ;;  %2193 = vmatpush3.bf16.msra.mxu1 (!%p161_p10), %v2190_v3  ;;  %s2335_s4 = scalar_lea.vmem (!%p161_p10), %s2334_s30, 8192 }
  0x13   : > { %2197 = vmatpush3.bf16.msra.mxu0 (!%p161_p10), %v2502_v5  ;;  %2032 = vmatprep.subr.mxu1 (!%p161_p10), %v1816_v49 }
  0x14   : > { %2086 = vmatprep.subr.mxu0 (!%p161_p10), %v2584_v50 }
  0x16   : > { %s189_s26 = scalar_select %p188_p11, %s2399_s15, 1  ;;  %2033 = vmatpush3.msra.mxu1 %v1816_v49 }
  0x17   : > { %2087 = vmatpush3.msra.mxu0 %v2584_v50  ;;  %2202 = vmatprep.subr.bf16.mxu1 %v2502_v5 }
  0x18   : > { %s2270_s8 = smul.u32 432, %s189_s26 }
  0x1a   : > { %s2507_s11 = scalar_lea.vmem %s3446_s0, %s2270_s8 }
  0x1b   : > { %v2511_v6 = vld [vmem:[%s2507_s11 + $0x8] sm:$0xff]  ;;  %v200_v7 = vld [vmem:[%s2507_s11 + $0x10] sm:$0x3]  ;;  %v2515_v8 = vld [vmem:[%s2507_s11] sm:$0xff] }
  0x1c   : > { %v302_v9 = vrot.slane %v2511_v6, 1  ;;  %v304_v10 = vrot.slane %v200_v7, 1  ;;  %v301_v11 = vrot.slane %v2515_v8, 1  ;;  %v2521_v12 = vld [vmem:[%s2507_s11 + $0x20] sm:$0xff]  ;;  %v203_v13 = vld [vmem:[%s2507_s11 + $0x28] sm:$0x3] }
  0x1d   : > { %v307_v14 = vrot.slane %v2521_v12, 1  ;;  %v309_v15 = vrot.slane %v203_v13, 1  ;;  %v2526_v16 = vld [vmem:[%s2507_s11 + $0x18] sm:$0xff]  ;;  %v484_v20 = vrot.slane %v2521_v12, 2  ;;  %v478_v21 = vrot.slane %v2515_v8, 2  ;;  %v2548_v32 = vld [vmem:[%s2507_s11 + $0x30] sm:$0xff] }
  0x1e   : > { %v305_v17 = vsel %vm300_vm0, %v302_v9, %v304_v10  ;;  %v303_v18 = vsel %vm300_vm0, %v301_v11, %v302_v9  ;;  %v306_v19 = vrot.slane %v2526_v16, 1  ;;  %v483_v24 = vrot.slane %v2526_v16, 2  ;;  %v2544_v30 = vld [vmem:[%s2507_s11 + $0x38] sm:$0xff]  ;;  %v206_v31 = vld [vmem:[%s2507_s11 + $0x40] sm:$0x3]  ;;  %v2560_v39 = vld [vmem:[%s2507_s11 + $0x50] sm:$0xff] }
  0x1f   : > { %383 = vrot.lane.b32.xlu1 %v305_v17, %s2409_s18  ;;  %381 = vrot.lane.b32.xlu0 %v303_v18, %s2409_s18  ;;  %v310_v22 = vsel %vm300_vm0, %v307_v14, %v309_v15  ;;  %v479_v25 = vrot.slane %v2511_v6, 2  ;;  %v486_v28 = vrot.slane %v203_v13, 2  ;;  %v481_v29 = vrot.slane %v200_v7, 2  ;;  %v209_v44 = vld [vmem:[%s2507_s11 + $0x58] sm:$0x3]  ;;  %v2567_v45 = vld [vmem:[%s2507_s11 + $0xc8] sm:$0xff] }
  0x20   : > { %v308_v23 = vsel %vm300_vm0, %v306_v19, %v307_v14  ;;  %v485_v26 = vsel %vm477_vm1, %v483_v24, %v484_v20  ;;  %v312_v33 = vrot.slane %v2544_v30, 1  ;;  %v314_v34 = vrot.slane %v206_v31, 1  ;;  %v2570_v46 = vld [vmem:[%s2507_s11 + $0x48] sm:$0xff]  ;;  %v2573_v47 = vld [vmem:[%s2507_s11 + $0xd0] sm:$0x3]  ;;  %v2576_v48 = vld [vmem:[%s2507_s11 + $0xe0] sm:$0xff] }
  0x21   : > { %v480_v27 = vsel %vm477_vm1, %v478_v21, %v479_v25  ;;  %v487_v35 = vsel %vm477_vm1, %v484_v20, %v486_v28  ;;  %v482_v36 = vsel %vm477_vm1, %v479_v25, %v481_v29  ;;  %v311_v37 = vrot.slane %v2548_v32, 1  ;;  %v227_v54 = vld [vmem:[%s2507_s11 + $0xe8] sm:$0x3]  ;;  %v2598_v60 = vld [vmem:[%s2507_s11 + $0xf8] sm:$0xff]  ;;  %v230_v2 = vld [vmem:[%s2507_s11 + $0x100] sm:$0x3] }
  0x22   : > { %v315_v38 = vsel %vm300_vm0, %v312_v33, %v314_v34  ;;  %v489_v41 = vrot.slane %v2544_v30, 2  ;;  %v491_v42 = vrot.slane %v206_v31, 2  ;;  %v488_v43 = vrot.slane %v2548_v32, 2  ;;  %v2603_v63 = vld [vmem:[%s2507_s11 + $0x68] sm:$0xff]  ;;  %v2616_v4 = vld [vmem:[%s2507_s11 + $0x70] sm:$0x3] }
  0x23   : > { %387 = vrot.lane.b32.xlu1 %v310_v22, %s2409_s18  ;;  %385 = vrot.lane.b32.xlu0 %v308_v23, %s2409_s18  ;;  %v313_v40 = vsel %vm300_vm0, %v311_v37, %v312_v33  ;;  %v317_v51 = vrot.slane %v2560_v39, 1  ;;  %v319_v52 = vrot.slane %v209_v44, 1  ;;  %v342_v53 = vrot.slane %v2567_v45, 1  ;;  %v2620_v10 = vld [vmem:[%s2507_s11 + $0x110] sm:$0xff]  ;;  %v2625_v14 = vld [vmem:[%s2507_s11 + $0x60] sm:$0xff] }
  0x24   : > { %v492_v55 = vsel %vm477_vm1, %v489_v41, %v491_v42  ;;  %v490_v56 = vsel %vm477_vm1, %v488_v43, %v489_v41  ;;  %v316_v57 = vrot.slane %v2570_v46, 1  ;;  %v344_v58 = vrot.slane %v2573_v47, 1  ;;  %v233_v18 = vld [vmem:[%s2507_s11 + $0x118] sm:$0x3]  ;;  %v236_v33 = vld [vmem:[%s2507_s11 + $0x130] sm:$0x3] }
  0x25   : > { %v347_v59 = vrot.slane %v2576_v48, 1  ;;  %v494_v61 = vrot.slane %v2560_v39, 2  ;;  %v496_v62 = vrot.slane %v209_v44, 2  ;;  %v349_v1 = vrot.slane %v227_v54, 1  ;;  %v239_v42 = vld [vmem:[%s2507_s11 + $0x148] sm:$0x3] }
  0x26   : > { %v2608_v0 = vsel %vm300_vm0, %v342_v53, %v344_v58  ;;  %v320_v3 = vsel %vm300_vm0, %v317_v51, %v319_v52  ;;  %v3466_v7 = vrot.slane %v2576_v48, 2  ;;  %v526_v9 = vrot.slane %v227_v54, 2  ;;  %v2675_v44 = vld [vmem:[%s2507_s11 + $0x88] sm:$0x3] }
  0x27   : > { %562 = vrot.lane.b32.xlu1 %v485_v26, %s2410_s19  ;;  %558 = vrot.lane.b32.xlu0 %v480_v27, %s2410_s19  ;;  %v318_v11 = vsel %vm300_vm0, %v316_v57, %v317_v51  ;;  %v493_v13 = vrot.slane %v2570_v46, 2  ;;  %v2630_v15 = vsel %vm300_vm0, %v347_v59, %v349_v1  ;;  %v3461_v17 = vrot.slane %v2598_v60, 1  ;;  %v2644_v26 = vld [vmem:[%s2507_s11 + $0x128] sm:$0xff] }
  0x28   : > { %v2637_v19 = vsel %vm477_vm1, %v3466_v7, %v526_v9  ;;  %v354_v20 = vrot.slane %v230_v2, 1  ;;  %v3459_v21 = vrot.slane %v2598_v60, 2  ;;  %v497_v22 = vsel %vm477_vm1, %v494_v61, %v496_v62  ;;  %v242_v9 = vld [vmem:[%s2507_s11 + $0x160] sm:$0x3] }
  0x29   : > { %v322_v23 = vrot.slane %v2603_v63, 1  ;;  %v531_v24 = vrot.slane %v230_v2, 2  ;;  %v3458_v25 = vrot.slane %v2620_v10, 1  ;;  %v324_v27 = vrot.slane %v2616_v4, 1  ;;  %v2697_v2 = vld [vmem:[%s2507_s11 + $0x78] sm:$0xff] }
  0x2a   : > { %v321_v28 = vrot.slane %v2625_v14, 1  ;;  %v2653_v29 = vsel %vm300_vm0, %v3461_v17, %v354_v20  ;;  %v359_v31 = vrot.slane %v233_v18, 1  ;;  %v495_v34 = vsel %vm477_vm1, %v493_v13, %v494_v61  ;;  %v2692_v61 = vld [vmem:[%s2507_s11 + $0x158] sm:$0xff]  ;;  %v2712_v20 = vld [vmem:[%s2507_s11 + $0x170] sm:$0xff] }
  0x2b   : > { %564 = vrot.lane.b32.xlu1 %v487_v35, %s2410_s19  ;;  %560 = vrot.lane.b32.xlu0 %v482_v36, %s2410_s19  ;;  %v2660_v35 = vsel %vm477_vm1, %v3459_v21, %v531_v24  ;;  %v3456_v36 = vrot.slane %v2620_v10, 2  ;;  %v536_v37 = vrot.slane %v233_v18, 2  ;;  %v3455_v41 = vrot.slane %v2644_v26, 1 }
  0x2c   : > { %v499_v43 = vrot.slane %v2603_v63, 2  ;;  %v364_v51 = vrot.slane %v236_v33, 1  ;;  %v3452_v52 = vrot.slane %v2644_v26, 2  ;;  %v501_v54 = vrot.slane %v2616_v4, 2 }
  0x2d   : > { %v2680_v49 = vsel %vm477_vm1, %v3456_v36, %v536_v37  ;;  %v541_v57 = vrot.slane %v236_v33, 2  ;;  %v325_v62 = vsel %vm300_vm0, %v322_v23, %v324_v27  ;;  %v323_v1 = vsel %vm300_vm0, %v321_v28, %v322_v23  ;;  %v245_v28 = vld [vmem:[%s2507_s11 + $0x178] sm:$0x3]  ;;  %v218_v36 = vld [vmem:[%s2507_s11 + $0xa0] sm:$0x3] }
  0x2e   : > { %v369_v4 = vrot.slane %v239_v42, 1  ;;  %v546_v18 = vrot.slane %v239_v42, 2  ;;  %v329_v23 = vrot.slane %v2675_v44, 1  ;;  %v3453_v27 = vrot.slane %v2692_v61, 1 }
  0x2f   : > { %391 = vrot.lane.b32.xlu1 %v315_v38, %s2409_s18  ;;  %389 = vrot.lane.b32.xlu0 %v313_v40, %s2409_s18  ;;  %v2664_v38 = vld [vmem:[%s2507_s11 + $0x140] sm:$0xff]  ;;  %v2669_v40 = vsel %vm300_vm0, %v3458_v25, %v359_v31  ;;  %v326_v31 = vrot.slane %v2697_v2, 1  ;;  %v3454_v37 = vrot.slane %v2692_v61, 2  ;;  %v502_v42 = vsel %vm477_vm1, %v499_v43, %v501_v54 }
  0x30   : > { %v3451_v58 = vrot.slane %v2664_v38, 1  ;;  %v3450_v13 = vrot.slane %v2664_v38, 2  ;;  %v506_v54 = vrot.slane %v2675_v44, 2 }
  0x32   : > { %v2719_v24 = vsel %vm300_vm0, %v3451_v58, %v369_v4  ;;  %v2729_v33 = vsel %vm477_vm1, %v3450_v13, %v546_v18  ;;  %v2736_v4 = vld [vmem:[%s2507_s11 + $0x188] sm:$0xff]  ;;  %v379_v13 = vrot.slane %v245_v28, 1  ;;  %v248_v58 = vld [vmem:[%s2507_s11 + $0x190] sm:$0x3] }
  0x33   : > { %568 = vrot.lane.b32.xlu1 %v492_v55, %s2410_s19  ;;  %566 = vrot.lane.b32.xlu0 %v490_v56, %s2410_s19  ;;  %v498_v55 = vrot.slane %v2625_v14, 2  ;;  %v2688_v56 = vld [vmem:[%s2507_s11 + $0x80] sm:$0xff] }
  0x37   : > { %395 = vrot.lane.b32.xlu1 %v320_v3, %s2409_s18  ;;  %393 = vrot.lane.b32.xlu0 %v318_v11, %s2409_s18  ;;  %v2702_v3 = vsel %vm300_vm0, %v3455_v41, %v364_v51  ;;  %v2708_v11 = vsel %vm477_vm1, %v3452_v52, %v541_v57  ;;  %v500_v51 = vsel %vm477_vm1, %v498_v55, %v499_v43  ;;  %v551_v57 = vrot.slane %v242_v9, 2  ;;  %v2747_v43 = vld [vmem:[%s2507_s11 + $0x98] sm:$0xff]  ;;  %v251_v41 = vld [vmem:[%s2507_s11 + $0x1a8] sm:$0x3] }
  0x38   : > { %v556_v52 = vrot.slane %v245_v28, 2  ;;  %v503_v28 = vrot.slane %v2697_v2, 2  ;;  %v1315_v21 = vrot.slane %v251_v41, 1 }
  0x39   : > { %v2752_v55 = vsel %vm477_vm1, %v3454_v37, %v551_v57  ;;  %v3462_v57 = vrot.slane %v2736_v4, 1  ;;  %v2766_v37 = vld [vmem:[%s2507_s11 + $0x1a0] sm:$0xff] }
  0x3a   : > { %v3464_v25 = vrot.slane %v2766_v37, 1  ;;  %v3465_v17 = vrot.slane %v2766_v37, 2 }
  0x3b   : > { %572 = vrot.lane.b32.xlu1 %v497_v22, %s2410_s19  ;;  %570 = vrot.lane.b32.xlu0 %v495_v34, %s2410_s19  ;;  %v327_v22 = vrot.slane %v2688_v56, 1  ;;  %v374_v34 = vrot.slane %v242_v9, 1  ;;  %v3460_v9 = vrot.slane %v2712_v20, 2 }
  0x3d   : > { %v2742_v18 = vsel %vm300_vm0, %v3453_v27, %v374_v34  ;;  %v330_v34 = vsel %vm300_vm0, %v327_v22, %v329_v23  ;;  %v328_v27 = vsel %vm300_vm0, %v326_v31, %v327_v22  ;;  %v729_v23 = vrot.slane %v248_v58, 1  ;;  %v2778_v31 = vld [vmem:[%s2507_s11 + $0x90] sm:$0xff] }
  0x3e   : > { %v3463_v22 = vrot.slane %v2736_v4, 2 }
  0x3f   : > { %399 = vrot.lane.b32.xlu1 %v325_v62, %s2409_s18  ;;  %397 = vrot.lane.b32.xlu0 %v323_v1, %s2409_s18  ;;  %v3457_v62 = vrot.slane %v2712_v20, 1  ;;  %v504_v1 = vrot.slane %v2688_v56, 2 }
  0x41   : > { %v2762_v44 = vsel %vm300_vm0, %v3457_v62, %v379_v13  ;;  %v740_v13 = vrot.slane %v248_v58, 2  ;;  %v2784_v62 = vsel %vm300_vm0, %v3462_v57, %v729_v23  ;;  %v505_v23 = vsel %vm477_vm1, %v503_v28, %v504_v1 }
  0x42   : > { %v331_v57 = vrot.slane %v2778_v31, 1 }
  0x43   : > { %576 = vrot.lane.b32.xlu1 %v502_v42, %s2410_s19  ;;  %574 = vrot.lane.b32.xlu0 %v500_v51, %s2410_s19  ;;  %v2774_v42 = vsel %vm477_vm1, %v3460_v9, %v556_v52  ;;  %v332_v51 = vrot.slane %v2747_v43, 1  ;;  %v507_v52 = vsel %vm477_vm1, %v504_v1, %v506_v54  ;;  %v334_v9 = vrot.slane %v218_v36, 1 }
  0x44   : > { %v2793_v58 = vsel %vm477_vm1, %v3463_v22, %v740_v13  ;;  %v1326_v54 = vrot.slane %v251_v41, 2  ;;  %v509_v1 = vrot.slane %v2747_v43, 2  ;;  %v511_v22 = vrot.slane %v218_v36, 2  ;;  %v1881_v41 = vld [vmem:[%s3447_s1 + $0x30] sm:$0xff] }
  0x45   : > { %v335_v28 = vsel %vm300_vm0, %v332_v51, %v334_v9  ;;  %v333_v13 = vsel %vm300_vm0, %v331_v57, %v332_v51 }
  0x46   : > { %v512_v9 = vsel %vm477_vm1, %v509_v1, %v511_v22 }
  0x47   : > { %403 = vrot.lane.b32.xlu1 %v330_v34, %s2409_s18  ;;  %401 = vrot.lane.b32.xlu0 %v328_v27, %s2409_s18  ;;  %v2801_v27 = vsel %vm300_vm0, %v3464_v25, %v1315_v21  ;;  %v2806_v34 = vsel %vm477_vm1, %v3465_v17, %v1326_v54  ;;  %v508_v21 = vrot.slane %v2778_v31, 2  ;;  %v2815_v25 = vld [vmem:[%s2507_s11 + $0xb0] sm:$0xff]  ;;  %v2825_v54 = vld [vmem:[%s2507_s11 + $0xa8] sm:$0xff] }
  0x48   : > { %v337_v36 = vrot.slane %v2815_v25, 1  ;;  %v336_v7 = vrot.slane %v2825_v54, 1  ;;  %v513_v22 = vrot.slane %v2825_v54, 2 }
  0x49   : > { %v510_v57 = vsel %vm477_vm1, %v508_v21, %v509_v1  ;;  %v2843_v1 = vld [vmem:[%s2507_s11 + $0xc0] sm:$0xff] }
  0x4b   : > { %580 = vrot.lane.b32.xlu1 %v507_v52, %s2410_s19  ;;  %578 = vrot.lane.b32.xlu0 %v505_v23, %s2410_s19  ;;  %v1882_v52 = vld [vmem:[%s3447_s1 + $0x38] sm:$0xff] }
  0x4c   : > { %v221_v23 = vld [vmem:[%s2507_s11 + $0xb8] sm:$0x3]  ;;  %v2827_v17 = vpack.c.bf16 %v1882_v52, %v1881_v41  ;;  %v514_v41 = vrot.slane %v2815_v25, 2 }
  0x4d   : > { %v339_v51 = vrot.slane %v221_v23, 1  ;;  %v516_v52 = vrot.slane %v221_v23, 2  ;;  %v519_v23 = vrot.slane %v2567_v45, 2 }
  0x4e   : > { %2199 = vmatprep.subr.bf16.mxu0 %v2827_v17 }
  0x4f   : > { %407 = vrot.lane.b32.xlu1 %v335_v28, %s2409_s18  ;;  %405 = vrot.lane.b32.xlu0 %v333_v13, %s2409_s18  ;;  %v340_v28 = vsel %vm300_vm0, %v337_v36, %v339_v51  ;;  %v338_v13 = vsel %vm300_vm0, %v336_v7, %v337_v36  ;;  %v517_v21 = vsel %vm477_vm1, %v514_v41, %v516_v52  ;;  %v521_v36 = vrot.slane %v2573_v47, 2 }
  0x50   : > { %v518_v51 = vrot.slane %v2843_v1, 2 }
  0x53   : > { %584 = vrot.lane.b32.xlu1 %v512_v9, %s2410_s19  ;;  %582 = vrot.lane.b32.xlu0 %v510_v57, %s2410_s19  ;;  %v515_v9 = vsel %vm477_vm1, %v513_v22, %v514_v41  ;;  %v341_v57 = vrot.slane %v2843_v1, 1  ;;  %v522_v41 = vsel %vm477_vm1, %v519_v23, %v521_v36  ;;  %v3469_v22 = vrot.slane %v2576_v48, 2 }
  0x55   : > { %v343_v7 = vsel %vm300_vm0, %v341_v57, %v342_v53 }
  0x57   : > { %411 = vrot.lane.b32.xlu1 %v340_v28, %s2409_s18  ;;  %409 = vrot.lane.b32.xlu0 %v338_v13, %s2409_s18  ;;  %v2859_v28 = vld [vmem:[%s2507_s11 + $0xd8] sm:$0xff]  ;;  %v520_v13 = vsel %vm477_vm1, %v518_v51, %v519_v23  ;;  %v3471_v23 = vrot.slane %v2598_v60, 2  ;;  %v3472_v51 = vrot.slane %v2620_v10, 1 }
  0x58   : > { %v346_v53 = vrot.slane %v2859_v28, 1  ;;  %v523_v52 = vrot.slane %v2859_v28, 2 }
  0x5a   : > { %v348_v47 = vsel %vm300_vm0, %v346_v53, %v347_v59  ;;  %v3470_v59 = vrot.slane %v2598_v60, 1  ;;  %v3473_v53 = vrot.slane %v2620_v10, 2 }
  0x5b   : > { %588 = vrot.lane.b32.xlu1 %v517_v21, %s2410_s19  ;;  %586 = vrot.lane.b32.xlu0 %v515_v9, %s2410_s19  ;;  %v525_v21 = vsel %vm477_vm1, %v523_v52, %v3469_v22  ;;  %v3474_v52 = vrot.slane %v2644_v26, 1 }
  0x5f   : > { %415 = vrot.lane.b32.xlu1 %v2608_v0, %s2409_s18  ;;  %413 = vrot.lane.b32.xlu0 %v343_v7, %s2409_s18  ;;  %v2874_v0 = vld [vmem:[%s2507_s11 + $0xf0] sm:$0xff]  ;;  %v2891_v7 = vld [vmem:[%s2507_s11 + $0x108] sm:$0xff] }
  0x60   : > { %v351_v9 = vrot.slane %v2874_v0, 1  ;;  %v356_v36 = vrot.slane %v2891_v7, 1 }
  0x62   : > { %v353_v57 = vsel %vm300_vm0, %v351_v9, %v3470_v59  ;;  %v3475_v9 = vrot.slane %v2644_v26, 2 }
  0x63   : > { %592 = vrot.lane.b32.xlu1 %v522_v41, %s2410_s19  ;;  %590 = vrot.lane.b32.xlu0 %v520_v13, %s2410_s19  ;;  %v358_v41 = vsel %vm300_vm0, %v356_v36, %v3472_v51  ;;  %v2908_v13 = vld [vmem:[%s2507_s11 + $0x120] sm:$0xff]  ;;  %v3478_v51 = vrot.slane %v2692_v61, 1 }
  0x67   : > { %419 = vrot.lane.b32.xlu1 %v2630_v15, %s2409_s18  ;;  %417 = vrot.lane.b32.xlu0 %v348_v47, %s2409_s18  ;;  %v528_v15 = vrot.slane %v2874_v0, 2  ;;  %v361_v47 = vrot.slane %v2908_v13, 1 }
  0x69   : > { %v363_v22 = vsel %vm300_vm0, %v361_v47, %v3474_v52 }
  0x6b   : > { %596 = vrot.lane.b32.xlu1 %v2637_v19, %s2410_s19  ;;  %594 = vrot.lane.b32.xlu0 %v525_v21, %s2410_s19  ;;  %v530_v19 = vsel %vm477_vm1, %v528_v15, %v3471_v23  ;;  %v2925_v21 = vld [vmem:[%s2507_s11 + $0x138] sm:$0xff]  ;;  %v2942_v23 = vld [vmem:[%s2507_s11 + $0x150] sm:$0xff] }
  0x6c   : > { %v366_v59 = vrot.slane %v2925_v21, 1 }
  0x6f   : > { %423 = vrot.lane.b32.xlu1 %v2653_v29, %s2409_s18  ;;  %421 = vrot.lane.b32.xlu0 %v353_v57, %s2409_s18  ;;  %v533_v29 = vrot.slane %v2891_v7, 2  ;;  %v3476_v57 = vrot.slane %v2664_v38, 1 }
  0x71   : > { %v368_v15 = vsel %vm300_vm0, %v366_v59, %v3476_v57  ;;  %v2976_v59 = vld [vmem:[%s2507_s11 + $0x180] sm:$0xff] }
  0x73   : > { %600 = vrot.lane.b32.xlu1 %v2660_v35, %s2410_s19  ;;  %598 = vrot.lane.b32.xlu0 %v530_v19, %s2410_s19  ;;  %v535_v35 = vsel %vm477_vm1, %v533_v29, %v3473_v53  ;;  %v3477_v19 = vrot.slane %v2664_v38, 2  ;;  %v2959_v29 = vld [vmem:[%s2507_s11 + $0x168] sm:$0xff]  ;;  %v3479_v53 = vrot.slane %v2692_v61, 2 }
  0x77   : > { %427 = vrot.lane.b32.xlu1 %v2669_v40, %s2409_s18  ;;  %425 = vrot.lane.b32.xlu0 %v358_v41, %s2409_s18  ;;  %v538_v40 = vrot.slane %v2908_v13, 2 }
  0x7b   : > { %604 = vrot.lane.b32.xlu1 %v2680_v49, %s2410_s19  ;;  %602 = vrot.lane.b32.xlu0 %v535_v35, %s2410_s19  ;;  %v540_v49 = vsel %vm477_vm1, %v538_v40, %v3475_v9  ;;  %v376_v35 = vrot.slane %v2959_v29, 1 }
  0x7f   : > { %431 = vrot.lane.b32.xlu1 %v2702_v3, %s2409_s18  ;;  %429 = vrot.lane.b32.xlu0 %v363_v22, %s2409_s18  ;;  %v543_v3 = vrot.slane %v2925_v21, 2  ;;  %v3480_v22 = vrot.slane %v2712_v20, 1 }
  0x81   : > { %v545_v36 = vsel %vm477_vm1, %v543_v3, %v3477_v19  ;;  %v378_v40 = vsel %vm300_vm0, %v376_v35, %v3480_v22  ;;  %v3010_v22 = vld [vmem:[%s2507_s11 + $0x198] sm:$0xff]  ;;  %s3317_s11 = scalar_lea.vmem [#allocation2], %s1812_s10 }
  0x82   : > { %s1725_s21 = sshll.u32 %s3317_s11, 4  ;;  %s3393_s21 = int_to_ptr.vmem [resolvable:$true] %s1725_s21 }
  0x83   : > { %608 = vrot.lane.b32.xlu1 %v2708_v11, %s2410_s19  ;;  %606 = vrot.lane.b32.xlu0 %v540_v49, %s2410_s19  ;;  %v371_v11 = vrot.slane %v2942_v23, 1  ;;  %s2329_s28 = scalar_lea.vmem %s3393_s21, 4096  ;;  %p2336_p1 = scmp.lt.s32.totalorder %s3393_s21, %s2334_s30 }
  0x84   : > { %p2330_p12 = scmp.ne.s32.totalorder %s3393_s21, %s2329_s28  ;;  %p2337_p2 = scmp.lt.s32.totalorder %s2335_s4, %s2329_s28 }
  0x85   : > { %v373_v41 = vsel %vm300_vm0, %v371_v11, %v3478_v51 }
  0x86   : > { %p2331_p13 = pnand %p2330_p12, %p2473_p4  ;;  %p2338_p3 = por %p2337_p2, %p2336_p1 }
  0x87   : > { %435 = vrot.lane.b32.xlu1 %v2719_v24, %s2409_s18  ;;  %433 = vrot.lane.b32.xlu0 %v368_v15, %s2409_s18  ;;  %v548_v24 = vrot.slane %v2942_v23, 2  ;;  %v726_v15 = vrot.slane %v2976_v59, 1 }
  0x88   : > { %p2332_p0 = pneg %p2331_p13 }
  0x8a   : > { %p2339_p5 = pnand %p2338_p3, %p2332_p0 }
  0x8b   : > { %612 = vrot.lane.b32.xlu1 %v2729_v33, %s2410_s19  ;;  %610 = vrot.lane.b32.xlu0 %v545_v36, %s2410_s19  ;;  %v550_v33 = vsel %vm477_vm1, %v548_v24, %v3479_v53 }
  0x8f   : > { %439 = vrot.lane.b32.xlu1 %v2742_v18, %s2409_s18  ;;  %437 = vrot.lane.b32.xlu0 %v373_v41, %s2409_s18  ;;  %v553_v18 = vrot.slane %v2959_v29, 2  ;;  %v737_v41 = vrot.slane %v2976_v59, 2 }
  0x91   : > { %v384_v47 = vpop.permute.xlu1 %383  ;;  %v382_v52 = vpop.permute.xlu0 %381 }
  0x92   : > { %v655_v3 = vsel %vm654_vm2, %v2515_v8, %v382_v52  ;;  %v3482_v8 = vrot.slane %v2736_v4, 1  ;;  %v656_v24 = vsel %vm654_vm2, %v2511_v6, %v384_v47  ;;  %v1883_v6 = vld [vmem:[%s3447_s1 + $0x40] sm:$0xff] }
  0x93   : > { %616 = vrot.lane.b32.xlu1 %v2752_v55, %s2410_s19  ;;  %614 = vrot.lane.b32.xlu0 %v550_v33, %s2410_s19  ;;  %v3481_v55 = vrot.slane %v2712_v20, 2 }
  0x95   : > { %v388_v9 = vpop.permute.xlu1 %387  ;;  %v386_v49 = vpop.permute.xlu0 %385  ;;  %v555_v57 = vsel %vm477_vm1, %v553_v18, %v3481_v55  ;;  %v1312_v18 = vrot.slane %v3010_v22, 1 }
  0x96   : > { %v657_v19 = vsel %vm654_vm2, %v2526_v16, %v386_v49  ;;  %v728_v16 = vsel %vm300_vm0, %v726_v15, %v3482_v8  ;;  %v658_v53 = vsel %vm654_vm2, %v2521_v12, %v388_v9  ;;  %v3483_v12 = vrot.slane %v2736_v4, 2 }
  0x97   : > { %443 = vrot.lane.b32.xlu1 %v2762_v44, %s2409_s18  ;;  %441 = vrot.lane.b32.xlu0 %v378_v40, %s2409_s18 }
  0x98   : > { %v739_v47 = vsel %vm477_vm1, %v737_v41, %v3483_v12 }
  0x99   : > { %v563_v36 = vpop.permute.xlu1 %562  ;;  %v559_v11 = vpop.permute.xlu0 %558 }
  0x9a   : > { %v690_v44 = vsel %vm687_vm3, %v657_v19, %v563_v36  ;;  %v688_v51 = vsel %vm687_vm3, %v655_v3, %v559_v11  ;;  %v1323_v3 = vrot.slane %v3010_v22, 2 }
  0x9b   : > { %620 = vrot.lane.b32.xlu1 %v2774_v42, %s2410_s19  ;;  %618 = vrot.lane.b32.xlu0 %v555_v57, %s2410_s19  ;;  %v3484_v57 = vrot.slane %v2766_v37, 1 }
  0x9c   : > { %2034 = vmatprep.mubr.msk.f32.mxu1 %vm756_vm4, %v690_v44  ;;  %2088 = vmatprep.mubr.msk.f32.mxu0 %vm756_vm4, %v688_v51 }
  0x9d   : > { %v565_v33 = vpop.permute.xlu1 %564  ;;  %v561_v42 = vpop.permute.xlu0 %560  ;;  %v1314_v15 = vsel %vm300_vm0, %v1312_v18, %v3484_v57 }
  0x9e   : > { %v691_v35 = vsel %vm687_vm3, %v658_v53, %v565_v33  ;;  %v689_v52 = vsel %vm687_vm3, %v656_v24, %v561_v42 }
  0x9f   : > { %733 = vrot.lane.b32.xlu1 %v2784_v62, %s2409_s18  ;;  %731 = vrot.lane.b32.xlu0 %v728_v16, %s2409_s18 }
  0xa0   : > { %2035 = vmatmul.mubr.msk.f32.vlgmr.msra.gmra.mrb[0].mxu1 %vm756_vm4, %v691_v35  ;;  %2089 = vmatmul.mubr.msk.f32.vlgmr.msra.gmra.mrb[0].mxu0 %vm756_vm4, %v689_v52 }
  0xa1   : > { %2091 = vmatprep.mubr.msk.f32.mxu0 %vm756_vm4, %v690_v44  ;;  %v392_v40 = vpop.permute.xlu1 %391  ;;  %v390_v62 = vpop.permute.xlu0 %389  ;;  %2201 = vmatpush3.bf16.msra.mxu0 %v2827_v17 }
  0xa2   : > { %2140 = vmatprep.subr.mxu0 %v1883_v6  ;;  %2204 = vmatpush3.bf16.msra.mxu1 %v2502_v5  ;;  %v660_v9 = vsel %vm654_vm2, %v2544_v30, %v392_v40  ;;  %v659_v17 = vsel %vm654_vm2, %v2548_v32, %v390_v62 }
  0xa3   : > { %744 = vrot.lane.b32.xlu1 %v2793_v58, %s2410_s19  ;;  %742 = vrot.lane.b32.xlu0 %v739_v47, %s2410_s19 }
  0xa4   : > { %2092 = vmatmul.mubr.msk.f32.gmra.mrb[2].mxu0 %vm756_vm4, %v691_v35  ;;  %2203 = vmatprep.subr.mxu1 %v2584_v50 }
  0xa5   : > { %v569_v49 = vpop.permute.xlu1 %568  ;;  %v567_v55 = vpop.permute.xlu0 %566  ;;  %2141 = vmatpush3.msra.mxu0 %v1883_v6 }
  0xa6   : > { %v3034_v5 = vsel %vm687_vm3, %v660_v9, %v569_v49  ;;  %v3037_v58 = vsel %vm687_vm3, %v659_v17, %v567_v55  ;;  %2205 = vmatpush3.msra.mxu1 %v2584_v50  ;;  %v3485_v50 = vrot.slane %v2766_v37, 2 }
  0xa7   : > { %2037 = vmatprep.mubr.msk.f32.mxu1 %vm756_vm4, %v3037_v58  ;;  %2094 = vmatprep.mubr.msk.f32.mxu0 %vm756_vm4, %v3037_v58 }
  0xa8   : > { %2038 = vmatmul.mubr.msk.f32.gmra.mrb[2].mxu1 %vm756_vm4, %v3034_v5  ;;  %2095 = vmatmul.mubr.msk.f32.gmra.mrb[4].mxu0 %vm756_vm4, %v3034_v5  ;;  %v1325_v19 = vsel %vm477_vm1, %v1323_v3, %v3485_v50 }
  0xa9   : > { %v396_v30 = vpop.permute.xlu1 %395  ;;  %v394_v32 = vpop.permute.xlu0 %393  ;;  %1317 = vrot.lane.b32.xlu0 %v1314_v15, %s2409_s18  ;;  %1319 = vrot.lane.b32.xlu1 %v2801_v27, %s2409_s18 }
  0xaa   : > { %v662_v36 = vsel %vm654_vm2, %v2560_v39, %v396_v30  ;;  %v661_v11 = vsel %vm654_vm2, %v2570_v46, %v394_v32 }
  0xad   : > { %v573_v44 = vpop.permute.xlu1 %572  ;;  %v571_v51 = vpop.permute.xlu0 %570  ;;  %1328 = vrot.lane.b32.xlu0 %v1325_v19, %s2410_s19  ;;  %1330 = vrot.lane.b32.xlu1 %v2806_v34, %s2410_s19  ;;  %s1922_s19 = sshll.u32 %s2399_s15, 12  ;;  %s3399_s15 = scalar_lea.sflag [#allocation3], %s185_s7 }
  0xae   : > { %v3066_v8 = vsel %vm687_vm3, %v662_v36, %v573_v44  ;;  %v694_v27 = vsel %vm687_vm3, %v661_v11, %v571_v51  ;;  %s3391_s27 = scalar_lea.hbm %s3449_s3, %s1922_s19 }
  0xaf   : > { %2040 = vmatprep.mubr.msk.f32.mxu1 %vm756_vm4, %v694_v27  ;;  %2097 = vmatprep.mubr.msk.f32.mxu0 %vm756_vm4, %v694_v27 }
  0xb0   : > { %2041 = vmatmul.mubr.msk.f32.gmra.mrb[4].mxu1 %vm756_vm4, %v3066_v8  ;;  %2098 = vmatmul.mubr.msk.f32.gmra.mrb[6].mxu0 %vm756_vm4, %v3066_v8 }
  0xb1   : > { %v400_v39 = vpop.permute.xlu1 %399  ;;  %v398_v46 = vpop.permute.xlu0 %397 }
  0xb2   : > { %v664_v34 = vsel %vm654_vm2, %v2603_v63, %v400_v39  ;;  %v663_v16 = vsel %vm654_vm2, %v2625_v14, %v398_v46 }
  0xb5   : > { %v577_v41 = vpop.permute.xlu1 %576  ;;  %v575_v24 = vpop.permute.xlu0 %574 }
  0xb6   : > { %v697_v53 = vsel %vm687_vm3, %v664_v34, %v577_v41  ;;  %v696_v33 = vsel %vm687_vm3, %v663_v16, %v575_v24 }
  0xb7   : > { %2043 = vmatprep.mubr.msk.f32.mxu1 %vm756_vm4, %v696_v33  ;;  %2100 = vmatprep.mubr.msk.f32.mxu0 %vm756_vm4, %v696_v33 }
  0xb8   : > { %2044 = vmatmul.mubr.msk.f32.gmra.mrb[6].mxu1 %vm756_vm4, %v697_v53  ;;  %2101 = vmatmul.mubr.msk.f32.gmra.mrb[8].mxu0 %vm756_vm4, %v697_v53 }
  0xb9   : > { %v404_v42 = vpop.permute.xlu1 %403  ;;  %v402_v35 = vpop.permute.xlu0 %401 }
  0xba   : > { %v666_v63 = vsel %vm654_vm2, %v2688_v56, %v404_v42  ;;  %v665_v14 = vsel %vm654_vm2, %v2697_v2, %v402_v35 }
  0xbd   : > { %v581_v52 = vpop.permute.xlu1 %580  ;;  %v579_v6 = vpop.permute.xlu0 %578 }
  0xbe   : > { %v699_v12 = vsel %vm687_vm3, %v666_v63, %v581_v52  ;;  %v698_v47 = vsel %vm687_vm3, %v665_v14, %v579_v6 }
  0xbf   : > { %2046 = vmatprep.mubr.msk.f32.mxu1 %vm756_vm4, %v698_v47  ;;  %2103 = vmatprep.mubr.msk.f32.mxu0 %vm756_vm4, %v698_v47 }
  0xc0   : > { %2047 = vmatmul.mubr.msk.f32.gmra.mrb[8].mxu1 %vm756_vm4, %v699_v12  ;;  %2104 = vmatmul.mubr.msk.f32.gmra.mrb[10].mxu0 %vm756_vm4, %v699_v12 }
  0xc1   : > { %v408_v40 = vpop.permute.xlu1 %407  ;;  %v406_v62 = vpop.permute.xlu0 %405 }
  0xc2   : > { %v668_v56 = vsel %vm654_vm2, %v2747_v43, %v408_v40  ;;  %v667_v2 = vsel %vm654_vm2, %v2778_v31, %v406_v62 }
  0xc5   : > { %v585_v18 = vpop.permute.xlu1 %584  ;;  %v583_v9 = vpop.permute.xlu0 %582 }
  0xc6   : > { %v701_v17 = vsel %vm687_vm3, %v668_v56, %v585_v18  ;;  %v700_v49 = vsel %vm687_vm3, %v667_v2, %v583_v9 }
  0xc7   : > { %2049 = vmatprep.mubr.msk.f32.mxu1 %vm756_vm4, %v700_v49  ;;  %2106 = vmatprep.mubr.msk.f32.mxu0 %vm756_vm4, %v700_v49 }
  0xc8   : > { %2050 = vmatmul.mubr.msk.f32.gmra.mrb[10].mxu1 %vm756_vm4, %v701_v17  ;;  %2107 = vmatmul.mubr.msk.f32.gmra.mrb[12].mxu0 %vm756_vm4, %v701_v17 }
  0xc9   : > { %v412_v55 = vpop.permute.xlu1 %411  ;;  %v410_v57 = vpop.permute.xlu0 %409 }
  0xca   : > { %v670_v43 = vsel %vm654_vm2, %v2815_v25, %v412_v55  ;;  %v669_v31 = vsel %vm654_vm2, %v2825_v54, %v410_v57 }
  0xcd   : > { %v589_v15 = vpop.permute.xlu1 %588  ;;  %v587_v3 = vpop.permute.xlu0 %586 }
  0xce   : > { %v703_v30 = vsel %vm687_vm3, %v670_v43, %v589_v15  ;;  %v702_v32 = vsel %vm687_vm3, %v669_v31, %v587_v3 }
  0xcf   : > { %2052 = vmatprep.mubr.msk.f32.mxu1 %vm756_vm4, %v702_v32  ;;  %2109 = vmatprep.mubr.msk.f32.mxu0 %vm756_vm4, %v702_v32 }
  0xd0   : > { %2053 = vmatmul.mubr.msk.f32.gmra.mrb[12].mxu1 %vm756_vm4, %v703_v30  ;;  %2110 = vmatmul.mubr.msk.f32.gmra.mrb[14].mxu0 %vm756_vm4, %v703_v30 }
  0xd1   : > { %v416_v50 = vpop.permute.xlu1 %415  ;;  %2142 = vmatprep.mubr.msk.f32.mxu0 %vm756_vm4, %v3037_v58  ;;  %v414_v25 = vpop.permute.xlu0 %413 }
  0xd2   : > { %v672_v54 = vsel %vm654_vm2, %v2567_v45, %v416_v50  ;;  %v671_v19 = vsel %vm654_vm2, %v2843_v1, %v414_v25 }
  0xd4   : > { %2143 = vmatmul.mubr.msk.f32.vlgmr.msra.gmra.mrb[0].mxu0 %vm756_vm4, %v3034_v5 }
  0xd5   : > { %v593_v36 = vpop.permute.xlu1 %592  ;;  %2145 = vmatprep.mubr.msk.f32.mxu0 %vm756_vm4, %v694_v27  ;;  %v591_v11 = vpop.permute.xlu0 %590 }
  0xd6   : > { %v3125_v44 = vsel %vm687_vm3, %v672_v54, %v593_v36  ;;  %v3128_v51 = vsel %vm687_vm3, %v671_v19, %v591_v11 }
  0xd7   : > { %2055 = vmatprep.mubr.msk.f32.mxu1 %vm756_vm4, %v3128_v51 }
  0xd8   : > { %2056 = vmatmul.mubr.msk.f32.gmra.mrb[14].mxu1 %vm756_vm4, %v3125_v44  ;;  %2146 = vmatmul.mubr.msk.f32.gmra.mrb[2].mxu0 %vm756_vm4, %v3066_v8 }
  0xd9   : > { %v420_v45 = vpop.permute.xlu1 %419  ;;  %2148 = vmatprep.mubr.msk.f32.mxu0 %vm756_vm4, %v696_v33  ;;  %v418_v1 = vpop.permute.xlu0 %417 }
  0xda   : > { %v674_v5 = vsel %vm654_vm2, %v2576_v48, %v420_v45  ;;  %v673_v58 = vsel %vm654_vm2, %v2859_v28, %v418_v1 }
  0xdc   : > { %2149 = vmatmul.mubr.msk.f32.gmra.mrb[4].mxu0 %vm756_vm4, %v697_v53 }
  0xdd   : > { %v597_v27 = vpop.permute.xlu1 %596  ;;  %2151 = vmatprep.mubr.msk.f32.mxu0 %vm756_vm4, %v698_v47  ;;  %v595_v39 = vpop.permute.xlu0 %594 }
  0xde   : > { %v3144_v46 = vsel %vm687_vm3, %v674_v5, %v597_v27  ;;  %v3147_v8 = vsel %vm687_vm3, %v673_v58, %v595_v39 }
  0xdf   : > { %2058 = vmatprep.mubr.msk.f32.mxu1 %vm756_vm4, %v3147_v8 }
  0xe0   : > { %2059 = vmatmul.mubr.msk.f32.gmra.mrb[16].mxu1 %vm756_vm4, %v3144_v46  ;;  %2152 = vmatmul.mubr.msk.f32.gmra.mrb[6].mxu0 %vm756_vm4, %v699_v12 }
  0xe1   : > { %v424_v48 = vpop.permute.xlu1 %423  ;;  %2154 = vmatprep.mubr.msk.f32.mxu0 %vm756_vm4, %v700_v49  ;;  %v422_v28 = vpop.permute.xlu0 %421 }
  0xe2   : > { %v676_v34 = vsel %vm654_vm2, %v2598_v60, %v424_v48  ;;  %v675_v16 = vsel %vm654_vm2, %v2874_v0, %v422_v28 }
  0xe4   : > { %2155 = vmatmul.mubr.msk.f32.gmra.mrb[8].mxu0 %vm756_vm4, %v701_v17 }
  0xe5   : > { %v601_v41 = vpop.permute.xlu1 %600  ;;  %2157 = vmatprep.mubr.msk.f32.mxu0 %vm756_vm4, %v702_v32  ;;  %v599_v24 = vpop.permute.xlu0 %598 }
  0xe6   : > { %v3162_v53 = vsel %vm687_vm3, %v676_v34, %v601_v41  ;;  %v3165_v33 = vsel %vm687_vm3, %v675_v16, %v599_v24 }
  0xe7   : > { %2061 = vmatprep.mubr.msk.f32.mxu1 %vm756_vm4, %v3165_v33 }
  0xe8   : > { %2062 = vmatmul.mubr.msk.f32.gmra.mrb[18].mxu1 %vm756_vm4, %v3162_v53  ;;  %2158 = vmatmul.mubr.msk.f32.gmra.mrb[10].mxu0 %vm756_vm4, %v703_v30 }
  0xe9   : > { %v428_v60 = vpop.permute.xlu1 %427  ;;  %2160 = vmatprep.mubr.msk.f32.mxu0 %vm756_vm4, %v3128_v51  ;;  %v426_v0 = vpop.permute.xlu0 %425 }
  0xea   : > { %v678_v42 = vsel %vm654_vm2, %v2620_v10, %v428_v60  ;;  %v677_v35 = vsel %vm654_vm2, %v2891_v7, %v426_v0 }
  0xec   : > { %2161 = vmatmul.mubr.msk.f32.gmra.mrb[12].mxu0 %vm756_vm4, %v3125_v44 }
  0xed   : > { %v605_v63 = vpop.permute.xlu1 %604  ;;  %2163 = vmatprep.mubr.msk.f32.mxu0 %vm756_vm4, %v3147_v8  ;;  %v603_v14 = vpop.permute.xlu0 %602 }
  0xee   : > { %v3183_v52 = vsel %vm687_vm3, %v678_v42, %v605_v63  ;;  %v3186_v6 = vsel %vm687_vm3, %v677_v35, %v603_v14 }
  0xef   : > { %2064 = vmatprep.mubr.msk.f32.mxu1 %vm756_vm4, %v3186_v6 }
  0xf0   : > { %2065 = vmatmul.mubr.msk.f32.gmra.mrb[20].mxu1 %vm756_vm4, %v3183_v52  ;;  %2164 = vmatmul.mubr.msk.f32.gmra.mrb[14].mxu0 %vm756_vm4, %v3144_v46 }
  0xf1   : > { %v432_v10 = vpop.permute.xlu1 %431  ;;  %2166 = vmatprep.mubr.msk.f32.mxu0 %vm756_vm4, %v3165_v33  ;;  %v430_v7 = vpop.permute.xlu0 %429 }
  0xf2   : > { %v680_v12 = vsel %vm654_vm2, %v2644_v26, %v432_v10  ;;  %v679_v47 = vsel %vm654_vm2, %v2908_v13, %v430_v7 }
  0xf4   : > { %2167 = vmatmul.mubr.msk.f32.gmra.mrb[16].mxu0 %vm756_vm4, %v3162_v53 }
  0xf5   : > { %v609_v40 = vpop.permute.xlu1 %608  ;;  %2169 = vmatprep.mubr.msk.f32.mxu0 %vm756_vm4, %v3186_v6  ;;  %v607_v62 = vpop.permute.xlu0 %606 }
  0xf6   : > { %v3205_v56 = vsel %vm687_vm3, %v680_v12, %v609_v40  ;;  %v3208_v2 = vsel %vm687_vm3, %v679_v47, %v607_v62 }
  0xf7   : > { %2067 = vmatprep.mubr.msk.f32.mxu1 %vm756_vm4, %v3208_v2 }
  0xf8   : > { %2068 = vmatmul.mubr.msk.f32.gmra.mrb[22].mxu1 %vm756_vm4, %v3205_v56  ;;  %2170 = vmatmul.mubr.msk.f32.gmra.mrb[18].mxu0 %vm756_vm4, %v3183_v52 }
  0xf9   : > { %v436_v26 = vpop.permute.xlu1 %435  ;;  %2172 = vmatprep.mubr.msk.f32.mxu0 %vm756_vm4, %v3208_v2  ;;  %v434_v13 = vpop.permute.xlu0 %433 }
  0xfa   : > { %v682_v18 = vsel %vm654_vm2, %v2664_v38, %v436_v26  ;;  %v681_v9 = vsel %vm654_vm2, %v2925_v21, %v434_v13 }
  0xfc   : > { %2173 = vmatmul.mubr.msk.f32.gmra.mrb[20].mxu0 %vm756_vm4, %v3205_v56 }
  0xfd   : > { %v613_v17 = vpop.permute.xlu1 %612  ;;  %v611_v49 = vpop.permute.xlu0 %610 }
  0xfe   : > { %v3225_v55 = vsel %vm687_vm3, %v682_v18, %v613_v17  ;;  %v714_v57 = vsel %vm687_vm3, %v681_v9, %v611_v49 }
  0xff   : > { %2070 = vmatprep.mubr.msk.f32.mxu1 %vm756_vm4, %v714_v57  ;;  %2175 = vmatprep.mubr.msk.f32.mxu0 %vm756_vm4, %v714_v57 }
 0x100   : > { %2071 = vmatmul.mubr.msk.f32.gmra.mrb[24].mxu1 %vm756_vm4, %v3225_v55  ;;  %2176 = vmatmul.mubr.msk.f32.gmra.mrb[22].mxu0 %vm756_vm4, %v3225_v55 }
 0x101   : > { %v440_v38 = vpop.permute.xlu1 %439  ;;  %v438_v43 = vpop.permute.xlu0 %437 }
 0x102   : > { %v684_v21 = vsel %vm654_vm2, %v2692_v61, %v440_v38  ;;  %v683_v31 = vsel %vm654_vm2, %v2942_v23, %v438_v43 }
 0x105   : > { %v617_v15 = vpop.permute.xlu1 %616  ;;  %v615_v3 = vpop.permute.xlu0 %614 }
 0x106   : > { %v717_v30 = vsel %vm687_vm3, %v684_v21, %v617_v15  ;;  %v716_v32 = vsel %vm687_vm3, %v683_v31, %v615_v3 }
 0x107   : > { %2073 = vmatprep.mubr.msk.f32.mxu1 %vm756_vm4, %v716_v32  ;;  %2178 = vmatprep.mubr.msk.f32.mxu0 %vm756_vm4, %v716_v32 }
 0x108   : > { %2074 = vmatmul.mubr.msk.f32.gmra.mrb[26].mxu1 %vm756_vm4, %v717_v30  ;;  %2179 = vmatmul.mubr.msk.f32.gmra.mrb[24].mxu0 %vm756_vm4, %v717_v30 }
 0x109   : > { %v444_v50 = vpop.permute.xlu1 %443  ;;  %v442_v25 = vpop.permute.xlu0 %441 }
 0x10a   : > { %v686_v61 = vsel %vm654_vm2, %v2712_v20, %v444_v50  ;;  %v685_v23 = vsel %vm654_vm2, %v2959_v29, %v442_v25 }
 0x10d   : > { %v621_v54 = vpop.permute.xlu1 %620  ;;  %v619_v19 = vpop.permute.xlu0 %618 }
 0x10e   : > { %v719_v36 = vsel %vm687_vm3, %v686_v61, %v621_v54  ;;  %v718_v11 = vsel %vm687_vm3, %v685_v23, %v619_v19 }
 0x10f   : > { %2076 = vmatprep.mubr.msk.f32.mxu1 %vm756_vm4, %v718_v11  ;;  %2181 = vmatprep.mubr.msk.f32.mxu0 %vm756_vm4, %v718_v11 }
 0x110   : > { %2077 = vmatmul.mubr.msk.f32.gmra.mrb[28].mxu1 %vm756_vm4, %v719_v36  ;;  %2182 = vmatmul.mubr.msk.f32.gmra.mrb[26].mxu0 %vm756_vm4, %v719_v36 }
 0x111   : > { %v734_v45 = vpop.permute.xlu1 %733  ;;  %v732_v1 = vpop.permute.xlu0 %731 }
 0x112   : > { %v749_v20 = vsel %vm654_vm2, %v2736_v4, %v734_v45  ;;  %v748_v29 = vsel %vm654_vm2, %v2976_v59, %v732_v1 }
 0x115   : > { %v745_v5 = vpop.permute.xlu1 %744  ;;  %v743_v58 = vpop.permute.xlu0 %742 }
 0x116   : > { %v751_v27 = vsel %vm687_vm3, %v749_v20, %v745_v5  ;;  %v750_v39 = vsel %vm687_vm3, %v748_v29, %v743_v58 }
 0x117   : > { %2079 = vmatprep.mubr.msk.f32.mxu1 %vm756_vm4, %v750_v39  ;;  %2184 = vmatprep.mubr.msk.f32.mxu0 %vm756_vm4, %v750_v39 }
 0x118   : > { %2080 = vmatmul.mubr.msk.f32.gmra.mrb[30].mxu1 %vm756_vm4, %v751_v27  ;;  %2185 = vmatmul.mubr.msk.f32.gmra.mrb[28].mxu0 %vm756_vm4, %v751_v27 }
 0x119   : > { %2112 = vmatprep.mubr.msk.f32.mxu1 %vm756_vm4, %v3128_v51 }
 0x11b   : > { %v1318_v4 = vpop.permute.xlu0 %1317  ;;  %v1320_v48 = vpop.permute.xlu1 %1319 }
 0x11c   : > { %2113 = vmatmul.mubr.msk.f32.vlgmr.msra.gmra.mrb[16].mxu1 %vm756_vm4, %v3125_v44  ;;  %v1334_v59 = vsel %vm654_vm2, %v3010_v22, %v1318_v4  ;;  %v1335_v28 = vsel %vm654_vm2, %v2766_v37, %v1320_v48 }
 0x11d   : > { %2115 = vmatprep.mubr.msk.f32.mxu1 %vm756_vm4, %v3147_v8 }
 0x11f   : > { %v1329_v34 = vpop.permute.xlu0 %1328  ;;  %v1331_v16 = vpop.permute.xlu1 %1330 }
 0x120   : > { %2116 = vmatmul.mubr.msk.f32.gmra.mrb[18].mxu1 %vm756_vm4, %v3144_v46  ;;  %v1336_v51 = vsel %vm687_vm3, %v1334_v59, %v1329_v34  ;;  %v1337_v41 = vsel %vm687_vm3, %v1335_v28, %v1331_v16 }
 0x121   : > { %2118 = vmatprep.mubr.msk.f32.mxu1 %vm756_vm4, %v3165_v33  ;;  %2187 = vmatprep.mubr.msk.f32.mxu0 %vm756_vm4, %v1336_v51 }
 0x122   : > { %2188 = vmatmul.mubr.msk.f32.gmra.mrb[30].mxu0 %vm756_vm4, %v1337_v41 }
 0x124   : > { %2119 = vmatmul.mubr.msk.f32.gmra.mrb[20].mxu1 %vm756_vm4, %v3162_v53 }
 0x125   : > { %2121 = vmatprep.mubr.msk.f32.mxu1 %vm756_vm4, %v3186_v6  ;;  %v3307_v6 = vld [vmem:[%s3448_s2] ss:$0 sm:$0xff] }
 0x128   : > { %2122 = vmatmul.mubr.msk.f32.gmra.mrb[22].mxu1 %vm756_vm4, %v3183_v52 }
 0x129   : > { %2124 = vmatprep.mubr.msk.f32.mxu1 %vm756_vm4, %v3208_v2 }
 0x12c   : > { %2125 = vmatmul.mubr.msk.f32.gmra.mrb[24].mxu1 %vm756_vm4, %v3205_v56 }
 0x12d   : > { %2127 = vmatprep.mubr.msk.f32.mxu1 %vm756_vm4, %v714_v57 }
 0x130   : > { %2128 = vmatmul.mubr.msk.f32.gmra.mrb[26].mxu1 %vm756_vm4, %v3225_v55 }
 0x131   : > { %2130 = vmatprep.mubr.msk.f32.mxu1 %vm756_vm4, %v716_v32 }
 0x134   : > { %2131 = vmatmul.mubr.msk.f32.gmra.mrb[28].mxu1 %vm756_vm4, %v717_v30 }
 0x135   : > { %2133 = vmatprep.mubr.msk.f32.mxu1 %vm756_vm4, %v718_v11 }
 0x138   : > { %2134 = vmatmul.mubr.msk.f32.gmra.mrb[30].mxu1 %vm756_vm4, %v719_v36 }
 0x173   : > { %v2036_v37 = vpop.f32.mrb[0].mxu1 }
 0x174   : > { %v919_v22 = vpop.f32.mrb[1].mxu1 }
 0x17b   : > { %v2039_v44 = vpop.f32.mrb[2].mxu1 }
 0x17c   : > { %v929_v46 = vpop.f32.mrb[3].mxu1 }
 0x183   : > { %v2042_v8 = vpop.f32.mrb[4].mxu1 }
 0x184   : > { %v939_v24 = vpop.f32.mrb[5].mxu1 }
 0x18b   : > { %v2045_v53 = vpop.f32.mrb[6].mxu1 }
 0x18c   : > { %v949_v33 = vpop.f32.mrb[7].mxu1 }
 0x193   : > { %v2048_v60 = vpop.f32.mrb[8].mxu1 }
 0x194   : > { %v959_v0 = vpop.f32.mrb[9].mxu1 }
 0x19b   : > { %v2051_v42 = vpop.f32.mrb[10].mxu1 }
 0x19c   : > { %v969_v35 = vpop.f32.mrb[11].mxu1 }
 0x1a3   : > { %v3299_v63 = vpop.f32.mrb[12].mxu1 }
 0x1a4   : > { %v3301_v14 = vpop.f32.mrb[13].mxu1 }
 0x1a7   : > { %v2144_v52 = vpop.f32.mrb[0].mxu0 }
 0x1a8   : > { %v2206_v10 = vadd.f32 %v2144_v52, %v2036_v37  ;;  %v1414_v7 = vpop.f32.mrb[1].mxu0 }
 0x1a9   : > { %v2207_v12 = vadd.f32 %v1414_v7, %v919_v22 }
 0x1aa   : > { %v1613_v47 = vadd.f32 %v2206_v10, %v3307_v6 }
 0x1ab   : > { %v1612_v40 = vadd.f32 %v2207_v12, %v3307_v6  ;;  %v3313_v62 = vpop.f32.mrb[14].mxu1  ;;  %v2147_v56 = vpop.f32.mrb[2].mxu0 }
 0x1ac   : > { %v1645_v2 = vmax.f32 %v1613_v47, 0.0  ;;  %v2208_v26 = vadd.f32 %v2147_v56, %v2039_v44  ;;  %v3315_v13 = vpop.f32.mrb[15].mxu1  ;;  %v1424_v18 = vpop.f32.mrb[3].mxu0 }
 0x1ad   : > { %v1644_v9 = vmax.f32 %v1612_v40, 0.0  ;;  %v2209_v17 = vadd.f32 %v1424_v18, %v929_v46 }
 0x1ae   : > { %1677 = vst [vmem:[%s3317_s11 + $0x8] sm:$0xff] %v1645_v2  ;;  %v1615_v49 = vadd.f32 %v2208_v26, %v3307_v6 }
 0x1af   : > { %1676 = vst [vmem:[%s3317_s11] sm:$0xff] %v1644_v9  ;;  %v1614_v55 = vadd.f32 %v2209_v17, %v3307_v6  ;;  %v2150_v57 = vpop.f32.mrb[4].mxu0 }
 0x1b0   : > { %v1647_v38 = vmax.f32 %v1615_v49, 0.0  ;;  %v2210_v43 = vadd.f32 %v2150_v57, %v2042_v8  ;;  %v1434_v21 = vpop.f32.mrb[5].mxu0 }
 0x1b1   : > { %v1646_v31 = vmax.f32 %v1614_v55, 0.0  ;;  %v2211_v15 = vadd.f32 %v1434_v21, %v939_v24 }
 0x1b2   : > { %1679 = vst [vmem:[%s3317_s11 + $0x18] sm:$0xff] %v1647_v38  ;;  %v1617_v3 = vadd.f32 %v2210_v43, %v3307_v6 }
 0x1b3   : > { %1678 = vst [vmem:[%s3317_s11 + $0x10] sm:$0xff] %v1646_v31  ;;  %v1616_v30 = vadd.f32 %v2211_v15, %v3307_v6  ;;  %v2153_v32 = vpop.f32.mrb[6].mxu0 }
 0x1b4   : > { %v1649_v50 = vmax.f32 %v1617_v3, 0.0  ;;  %v2212_v25 = vadd.f32 %v2153_v32, %v2045_v53  ;;  %v1444_v61 = vpop.f32.mrb[7].mxu0 }
 0x1b5   : > { %v1648_v23 = vmax.f32 %v1616_v30, 0.0  ;;  %v2213_v54 = vadd.f32 %v1444_v61, %v949_v33 }
 0x1b6   : > { %1681 = vst [vmem:[%s3317_s11 + $0x28] sm:$0xff] %v1649_v50  ;;  %v1619_v19 = vadd.f32 %v2212_v25, %v3307_v6 }
 0x1b7   : > { %1680 = vst [vmem:[%s3317_s11 + $0x20] sm:$0xff] %v1648_v23  ;;  %v1618_v36 = vadd.f32 %v2213_v54, %v3307_v6  ;;  %v2156_v11 = vpop.f32.mrb[8].mxu0 }
 0x1b8   : > { %v1651_v45 = vmax.f32 %v1619_v19, 0.0  ;;  %v2214_v1 = vadd.f32 %v2156_v11, %v2048_v60  ;;  %v1454_v20 = vpop.f32.mrb[9].mxu0 }
 0x1b9   : > { %v1650_v29 = vmax.f32 %v1618_v36, 0.0  ;;  %v2215_v5 = vadd.f32 %v1454_v20, %v959_v0 }
 0x1ba   : > { %1683 = vst [vmem:[%s3317_s11 + $0x38] sm:$0xff] %v1651_v45  ;;  %v1621_v58 = vadd.f32 %v2214_v1, %v3307_v6 }
 0x1bb   : > { %1682 = vst [vmem:[%s3317_s11 + $0x30] sm:$0xff] %v1650_v29  ;;  %v1620_v27 = vadd.f32 %v2215_v5, %v3307_v6  ;;  %v2159_v39 = vpop.f32.mrb[10].mxu0 }
 0x1bc   : > { %v1653_v4 = vmax.f32 %v1621_v58, 0.0  ;;  %v2216_v48 = vadd.f32 %v2159_v39, %v2051_v42  ;;  %v1464_v59 = vpop.f32.mrb[11].mxu0 }
 0x1bd   : > { %v1652_v28 = vmax.f32 %v1620_v27, 0.0  ;;  %v2217_v34 = vadd.f32 %v1464_v59, %v969_v35 }
 0x1be   : > { %1685 = vst [vmem:[%s3317_s11 + $0x48] sm:$0xff] %v1653_v4  ;;  %v1623_v16 = vadd.f32 %v2216_v48, %v3307_v6 }
 0x1bf   : > { %1684 = vst [vmem:[%s3317_s11 + $0x40] sm:$0xff] %v1652_v28  ;;  %v1622_v51 = vadd.f32 %v2217_v34, %v3307_v6  ;;  %v2162_v41 = vpop.f32.mrb[12].mxu0 }
 0x1c0   : > { %v1655_v37 = vmax.f32 %v1623_v16, 0.0  ;;  %v2218_v22 = vadd.f32 %v2162_v41, %v3299_v63  ;;  %v1474_v44 = vpop.f32.mrb[13].mxu0 }
 0x1c1   : > { %v1654_v46 = vmax.f32 %v1622_v51, 0.0  ;;  %v2219_v8 = vadd.f32 %v1474_v44, %v3301_v14 }
 0x1c2   : > { %1687 = vst [vmem:[%s3317_s11 + $0x58] sm:$0xff] %v1655_v37  ;;  %v1625_v24 = vadd.f32 %v2218_v22, %v3307_v6 }
 0x1c3   : > { %1686 = vst [vmem:[%s3317_s11 + $0x50] sm:$0xff] %v1654_v46  ;;  %v1624_v53 = vadd.f32 %v2219_v8, %v3307_v6  ;;  %v2165_v33 = vpop.f32.mrb[14].mxu0 }
 0x1c4   : > { %v1657_v60 = vmax.f32 %v1625_v24, 0.0  ;;  %v2220_v0 = vadd.f32 %v2165_v33, %v3313_v62  ;;  %v1484_v42 = vpop.f32.mrb[15].mxu0 }
 0x1c5   : > { %v1656_v35 = vmax.f32 %v1624_v53, 0.0  ;;  %v2221_v63 = vadd.f32 %v1484_v42, %v3315_v13 }
 0x1c6   : > { %1689 = vst [vmem:[%s3317_s11 + $0x68] sm:$0xff] %v1657_v60  ;;  %v1627_v52 = vadd.f32 %v2220_v0, %v3307_v6 }
 0x1c7   : > { %1688 = vst [vmem:[%s3317_s11 + $0x60] sm:$0xff] %v1656_v35  ;;  %v1626_v14 = vadd.f32 %v2221_v63, %v3307_v6  ;;  %v2168_v10 = vpop.f32.mrb[16].mxu0 }
 0x1c8   : > { %v1659_v7 = vmax.f32 %v1627_v52, 0.0  ;;  %v1494_v12 = vpop.f32.mrb[17].mxu0 }
 0x1c9   : > { %v1658_v47 = vmax.f32 %v1626_v14, 0.0 }
 0x1ca   : > { %1691 = vst [vmem:[%s3317_s11 + $0x78] sm:$0xff] %v1659_v7 }
 0x1cb   : > { %1690 = vst [vmem:[%s3317_s11 + $0x70] sm:$0xff] %v1658_v47  ;;  %v2171_v40 = vpop.f32.mrb[18].mxu0 }
 0x1cc   : > { %v1504_v56 = vpop.f32.mrb[19].mxu0 }
 0x1cf   : > { %v2174_v2 = vpop.f32.mrb[20].mxu0 }
 0x1d0   : > { %v1514_v62 = vpop.f32.mrb[21].mxu0 }
 0x1d3   : > { %v2177_v26 = vpop.f32.mrb[22].mxu0 }
 0x1d4   : > { %v1524_v18 = vpop.f32.mrb[23].mxu0 }
 0x1db   : > { %v2180_v9 = vpop.f32.mrb[24].mxu0 }
 0x1dc   : > { %v1534_v13 = vpop.f32.mrb[25].mxu0 }
 0x1e3   : > { %v2183_v17 = vpop.f32.mrb[26].mxu0 }
 0x1e4   : > { %v1544_v49 = vpop.f32.mrb[27].mxu0 }
 0x1eb   : > { %v2186_v55 = vpop.f32.mrb[28].mxu0 }
 0x1ec   : > { %v3353_v57 = vpop.f32.mrb[29].mxu0 }
 0x1ef   : > { %v2114_v38 = vpop.f32.mrb[16].mxu1 }
 0x1f0   : > { %v2222_v43 = vadd.f32 %v2168_v10, %v2114_v38  ;;  %v1230_v21 = vpop.f32.mrb[17].mxu1 }
 0x1f1   : > { %v2223_v31 = vadd.f32 %v1494_v12, %v1230_v21 }
 0x1f2   : > { %v1629_v15 = vadd.f32 %v2222_v43, %v3307_v6 }
 0x1f3   : > { %v1628_v3 = vadd.f32 %v2223_v31, %v3307_v6  ;;  %v2117_v30 = vpop.f32.mrb[18].mxu1 }
 0x1f4   : > { %v1661_v32 = vmax.f32 %v1629_v15, 0.0  ;;  %v2224_v50 = vadd.f32 %v2171_v40, %v2117_v30  ;;  %v1240_v25 = vpop.f32.mrb[19].mxu1 }
 0x1f5   : > { %v1660_v61 = vmax.f32 %v1628_v3, 0.0  ;;  %v2225_v23 = vadd.f32 %v1504_v56, %v1240_v25  ;;  %v2189_v54 = vpop.f32.mrb[30].mxu0 }
 0x1f6   : > { %1693 = vst [vmem:[%s3317_s11 + $0x88] sm:$0xff] %v1661_v32  ;;  %v1631_v19 = vadd.f32 %v2224_v50, %v3307_v6  ;;  %v1564_v36 = vpop.f32.mrb[31].mxu0 }
 0x1f7   : > { %1692 = vst [vmem:[%s3317_s11 + $0x80] sm:$0xff] %v1660_v61  ;;  %v1630_v11 = vadd.f32 %v2225_v23, %v3307_v6  ;;  %v2120_v45 = vpop.f32.mrb[20].mxu1 }
 0x1f8   : > { %v1663_v1 = vmax.f32 %v1631_v19, 0.0  ;;  %v2226_v20 = vadd.f32 %v2174_v2, %v2120_v45  ;;  %v1250_v29 = vpop.f32.mrb[21].mxu1 }
 0x1f9   : > { %v1662_v5 = vmax.f32 %v1630_v11, 0.0  ;;  %v2227_v58 = vadd.f32 %v1514_v62, %v1250_v29 }
 0x1fa   : > { %1695 = vst [vmem:[%s3317_s11 + $0x98] sm:$0xff] %v1663_v1  ;;  %v1633_v27 = vadd.f32 %v2226_v20, %v3307_v6 }
 0x1fb   : > { %1694 = vst [vmem:[%s3317_s11 + $0x90] sm:$0xff] %v1662_v5  ;;  %v1632_v39 = vadd.f32 %v2227_v58, %v3307_v6  ;;  %v2123_v4 = vpop.f32.mrb[22].mxu1 }
 0x1fc   : > { %v1665_v48 = vmax.f32 %v1633_v27, 0.0  ;;  %v2228_v59 = vadd.f32 %v2177_v26, %v2123_v4  ;;  %v1260_v28 = vpop.f32.mrb[23].mxu1 }
 0x1fd   : > { %v1664_v34 = vmax.f32 %v1632_v39, 0.0  ;;  %v2229_v16 = vadd.f32 %v1524_v18, %v1260_v28 }
 0x1fe   : > { %1697 = vst [vmem:[%s3317_s11 + $0xa8] sm:$0xff] %v1665_v48  ;;  %v1635_v51 = vadd.f32 %v2228_v59, %v3307_v6 }
 0x1ff   : > { %1696 = vst [vmem:[%s3317_s11 + $0xa0] sm:$0xff] %v1664_v34  ;;  %v1634_v41 = vadd.f32 %v2229_v16, %v3307_v6  ;;  %v2126_v37 = vpop.f32.mrb[24].mxu1 }
 0x200   : > { %v1667_v22 = vmax.f32 %v1635_v51, 0.0  ;;  %v2230_v44 = vadd.f32 %v2180_v9, %v2126_v37  ;;  %v1270_v46 = vpop.f32.mrb[25].mxu1 }
 0x201   : > { %v1666_v8 = vmax.f32 %v1634_v41, 0.0  ;;  %v2231_v24 = vadd.f32 %v1534_v13, %v1270_v46 }
 0x202   : > { %1699 = vst [vmem:[%s3317_s11 + $0xb8] sm:$0xff] %v1667_v22  ;;  %v1637_v53 = vadd.f32 %v2230_v44, %v3307_v6 }
 0x203   : > { %1698 = vst [vmem:[%s3317_s11 + $0xb0] sm:$0xff] %v1666_v8  ;;  %v1636_v33 = vadd.f32 %v2231_v24, %v3307_v6  ;;  %v2129_v60 = vpop.f32.mrb[26].mxu1 }
 0x204   : > { %v1669_v0 = vmax.f32 %v1637_v53, 0.0  ;;  %v2232_v42 = vadd.f32 %v2183_v17, %v2129_v60  ;;  %v1280_v35 = vpop.f32.mrb[27].mxu1 }
 0x205   : > { %v1668_v63 = vmax.f32 %v1636_v33, 0.0  ;;  %v2233_v52 = vadd.f32 %v1544_v49, %v1280_v35 }
 0x206   : > { %1701 = vst [vmem:[%s3317_s11 + $0xc8] sm:$0xff] %v1669_v0  ;;  %v1639_v14 = vadd.f32 %v2232_v42, %v3307_v6 }
 0x207   : > { %1700 = vst [vmem:[%s3317_s11 + $0xc0] sm:$0xff] %v1668_v63  ;;  %v1638_v10 = vadd.f32 %v2233_v52, %v3307_v6  ;;  %v2132_v7 = vpop.f32.mrb[28].mxu1 }
 0x208   : > { %v1671_v12 = vmax.f32 %v1639_v14, 0.0  ;;  %v2234_v47 = vadd.f32 %v2186_v55, %v2132_v7  ;;  %v1290_v40 = vpop.f32.mrb[29].mxu1 }
 0x209   : > { %v1670_v56 = vmax.f32 %v1638_v10, 0.0  ;;  %v2235_v2 = vadd.f32 %v3353_v57, %v1290_v40 }
 0x20a   : > { %1703 = vst [vmem:[%s3317_s11 + $0xd8] sm:$0xff] %v1671_v12  ;;  %v1641_v62 = vadd.f32 %v2234_v47, %v3307_v6 }
 0x20b   : > { %1702 = vst [vmem:[%s3317_s11 + $0xd0] sm:$0xff] %v1670_v56  ;;  %v1640_v26 = vadd.f32 %v2235_v2, %v3307_v6  ;;  %v2135_v18 = vpop.f32.mrb[30].mxu1 }
 0x20c   : > { %v1673_v9 = vmax.f32 %v1641_v62, 0.0  ;;  %v2236_v13 = vadd.f32 %v2189_v54, %v2135_v18  ;;  %v1300_v17 = vpop.f32.mrb[31].mxu1 }
 0x20d   : > { %v1672_v49 = vmax.f32 %v1640_v26, 0.0  ;;  %v2237_v55 = vadd.f32 %v1564_v36, %v1300_v17 }
 0x20e   : > { %1705 = vst [vmem:[%s3317_s11 + $0xe8] sm:$0xff] %v1673_v9  ;;  %v1643_v57 = vadd.f32 %v2236_v13, %v3307_v6 }
 0x20f   : > { %1704 = vst [vmem:[%s3317_s11 + $0xe0] sm:$0xff] %v1672_v49  ;;  %v1642_v38 = vadd.f32 %v2237_v55, %v3307_v6 }
 0x210   : > { %v1675_v43 = vmax.f32 %v1643_v57, 0.0 }
 0x211   : > { %v1674_v21 = vmax.f32 %v1642_v38, 0.0 }
 0x212   : > { %1707 = vst [vmem:[%s3317_s11 + $0xf8] sm:$0xff] %v1675_v43 }
 0x213   : > { %1706 = vst [vmem:[%s3317_s11 + $0xf0] sm:$0xff] %v1674_v21 }
 0x214   : > { %2342 = shalt.err (!%p2339_p5)
}
 0x215   : > { %s2343_s5 = scalar_lea.hbm %s3391_s27, 4096  ;;  %s2347_s8 = scalar_lea.hbm %s3449_s3, 8192 }
 0x216   : > { %p2344_p6 = scmp.ne.s32.totalorder %s3391_s27, %s2343_s5  ;;  %p2348_p10 = scmp.lt.u32.totalorder %s3391_s27, %s3449_s3 }
 0x217   : > { %p2349_p11 = scmp.lt.u32.totalorder %s2347_s8, %s2343_s5  ;;  %p2351_p13 = scmp.lt.u32.totalorder %s2343_s5, %s3391_s27 }
 0x218   : > { %p2345_p7 = pnand %p2344_p6, %p2473_p4 }
 0x219   : > { %p2350_p12 = por %p2349_p11, %p2348_p10 }
 0x21a   : > { %p2346_p9 = pneg %p2345_p7 }
 0x21b   : > { %p2352_p0 = por %p2351_p13, %p2350_p12 }
 0x21d   : > { %p2353_p1 = pnand %p2352_p0, %p2346_p9 }
 0x21f   : > { %2356 = shalt.err (!%p2353_p1)
}
 0x220   : > { %s2412_s11 = smov 128  }
 0x221   : > { %2271 = dma.vmem_to_hbm [thread:$0]  (%p2473_p4), %s3393_s21, 4096, %s3391_s27, %s3399_s15, %s2412_s11, %s2412_s11, %s2409_s18  }
 0x222 PF: > { %p2277_p2 = scmp.ge.s32.totalorder %s2407_s17, 2  ;;  %s1740_s19 = sand.u32 1, %s2387_s12  }
 0x223   : > { %s1741_s23 = scalar_lea.sflag [#allocation3], %s1740_s19 }
 0x224   : > { %p2274_p3 = pnand %p2277_p2, %p2480_p8 }
 0x226   : > { %2382 = dma.done.wait (!%p2274_p3), %s1741_s23, 4096  }
 0x227   : > { %2384 = vsyncadd (!%p2274_p3), %s1741_s23, 4294963200  ;;  %s16_s17 = sadd.s32 1, %s2407_s17   ;;  %s3486_s12 = smov %s2391_s13 }
 0x228   : > { %p13_p5 = scmp.ge.s32.totalorder %s16_s17, 4   ;;  %s3487_s13 = smov %s2395_s14 }
 0x229   : > { %s3488_s14 = smov %s2486_s25  ;;  %s3489_s15 = smov %s2403_s16 }
 0x22a   : > { %s3490_s16 = smov %s3492_s20  ;;  %15 = sbr.rel (!%p13_p5) target bundleno = 4 (0x4), region = 69 }
 0x231   :  { %1746 = vsyncpa [#allocation3], 1 }
 0x232   :  { %1748 = vsyncpa [#allocation3 + $0x1], 1 }

</bundles_post_ra>
